<compile_context>
chip_gen: v7x
topology: tpu7x:2x2x1
jax: 0.10.0
libtpu: 0.0.40
codegen_flags: <defaults>
</compile_context>

<pallas_src>
import math

import jax
import jax.numpy as jnp
from jax.experimental import pallas as pl
from jax.experimental.pallas import tpu as pltpu

IN_FEATURES = 2048   # inception_v3 -> backbone.fc.in_features
HIDDEN = 512         # projection head hidden width (hard-coded in the module)
BN_EPS = 1e-5        # nn.BatchNorm1d default


# --------------------------------------------------------------------------
# Fused projection-head kernel (single grid step — whole problem fits VMEM):
#   h   = x @ W1                       (W1 streamed bf16, f32 accumulate)
#   h   = BN_train(h) * gamma + beta   (b1 omitted: cancelled by mean-sub)
#   h   = relu(h)
#   out = h @ W2 + b2
# --------------------------------------------------------------------------
def projection_head_kernel(x_ref, w1_ref, gamma_ref, beta_ref,
                           w2_ref, b2_ref, o_ref):
    # First Linear (2048 -> 512). W1 arrives as bf16 (half the HBM bytes);
    # upcast in VMEM and accumulate in f32 on the MXU.
    h = jnp.dot(x_ref[...], w1_ref[...].astype(jnp.float32),
                preferred_element_type=jnp.float32)
    # NOTE: the Linear bias b1 (constant per feature) is mathematically
    # cancelled by the BatchNorm batch-mean subtraction below, so it is not
    # loaded or added.

    # BatchNorm1d (training mode): batch mean & biased variance over axis 0,
    # with the affine gamma fused into the normalization scale.
    mean = jnp.mean(h, axis=0, keepdims=True)
    centered = h - mean
    var = jnp.mean(centered * centered, axis=0, keepdims=True)
    scale = gamma_ref[...] * jax.lax.rsqrt(var + BN_EPS)     # (1, H)
    h_bn = centered * scale + beta_ref[...]

    # ReLU
    h_act = jnp.maximum(h_bn, 0.0)

    # Second Linear (512 -> output_dim_padded), f32.
    out = jnp.dot(h_act, w2_ref[...],
                  preferred_element_type=jnp.float32) + b2_ref[...]
    o_ref[...] = out.astype(o_ref.dtype)


def projection_head_pallas(feats, params):
    """feats: (B, IN_FEATURES) f32 backbone features -> (B, output_dim)."""
    B, D = feats.shape
    H = params["w1"].shape[1]
    O = params["w2"].shape[1]

    # Keep the output block lane-dense: pad output_dim up to a multiple of 128
    # and slice back after the call.
    O_pad = ((O + 127) // 128) * 128
    if O_pad != O:
        w2 = jnp.pad(params["w2"], ((0, 0), (0, O_pad - O)))
        b2 = jnp.pad(params["b2"], ((0, 0), (0, O_pad - O)))
    else:
        w2, b2 = params["w2"], params["b2"]

    # W1 streamed as bf16 (dominant HBM traffic halved); everything else f32.
    w1_bf16 = params["w1"].astype(jnp.bfloat16)

    # Advisory cost: bytes dwarf FLOPs at this size.
    bytes_accessed = (feats.size * 4 + w1_bf16.size * 2 + w2.size * 4
                      + (2 * H + O_pad) * 4 + B * O_pad * 4)
    cost = pl.CostEstimate(flops=2 * B * D * H + 2 * B * H * O_pad,
                           transcendentals=0,
                           bytes_accessed=bytes_accessed)

    out = pl.pallas_call(
        projection_head_kernel,
        out_shape=jax.ShapeDtypeStruct((B, O_pad), jnp.float32),
        grid_spec=pltpu.PrefetchScalarGridSpec(
            num_scalar_prefetch=0,
            grid=(1,),                                      # single step: no K pipeline
            in_specs=[
                pl.BlockSpec((B, D), lambda i: (0, 0)),      # features (f32)
                pl.BlockSpec((D, H), lambda i: (0, 0)),      # W1 (bf16)
                pl.BlockSpec((1, H), lambda i: (0, 0)),      # gamma
                pl.BlockSpec((1, H), lambda i: (0, 0)),      # beta
                pl.BlockSpec((H, O_pad), lambda i: (0, 0)),  # W2
                pl.BlockSpec((1, O_pad), lambda i: (0, 0)),  # b2
            ],
            out_specs=pl.BlockSpec((B, O_pad), lambda i: (0, 0)),
        ),
        # Fits comfortably in the default scoped VMEM (≈4.7 MB double-buffered
        # + ~4 MB in-kernel W1 upcast) on v5e/v6e/v7x; no vmem_limit override.
        compiler_params=pltpu.CompilerParams(
            dimension_semantics=("arbitrary",)),
        cost_estimate=cost,
    )(feats, w1_bf16, params["gamma"], params["beta"], w2, b2)

    return out[:, :O]


def contrastive_model_forward(feats, params):
    # TODO(synk): x = self.backbone(images) is not implemented (inception_v3);
    # `feats` stands for the backbone output (B, 2048).
    return projection_head_pallas(feats, params)


# --------------------------------------------------------------------------
# Deterministic parameter init mirroring the PyTorch module's __init__:
#   nn.Linear -> xavier_uniform_ weights, bias filled with 0.01
#   nn.BatchNorm1d -> gamma = 1, beta = 0
# W1 is stored in bf16 (the kernel's streaming dtype); the reference upcasts.
# --------------------------------------------------------------------------
def init_params(key, output_dim):
    k1, k2 = jax.random.split(key)

    def xavier_uniform(k, fan_in, fan_out):
        bound = math.sqrt(6.0 / (fan_in + fan_out))
        return jax.random.uniform(k, (fan_in, fan_out), jnp.float32,
                                  minval=-bound, maxval=bound)

    return {
        "w1": xavier_uniform(k1, IN_FEATURES, HIDDEN).astype(jnp.bfloat16),
        "b1": jnp.full((1, HIDDEN), 0.01, jnp.float32),   # cancelled by BN; ref only
        "gamma": jnp.ones((1, HIDDEN), jnp.float32),
        "beta": jnp.zeros((1, HIDDEN), jnp.float32),
        "w2": xavier_uniform(k2, HIDDEN, output_dim),
        "b2": jnp.full((1, output_dim), 0.01, jnp.float32),
    }


def reference_forward(feats, params):
    h = feats @ params["w1"].astype(jnp.float32) + params["b1"]
    mean = h.mean(axis=0, keepdims=True)
    var = ((h - mean) ** 2).mean(axis=0, keepdims=True)
    h = (h - mean) / jnp.sqrt(var + BN_EPS)
    h = h * params["gamma"] + params["beta"]
    h = jnp.maximum(h, 0.0)
    return h @ params["w2"] + params["b2"]


if __name__ == "__main__":
    OUTPUT_DIM = 128
    BATCH = 8

    key = jax.random.PRNGKey(0)
    k_feat, k_param = jax.random.split(key)

    # Stand-in for inception_v3 backbone output features (B, 2048).
    feats = jax.random.normal(k_feat, (BATCH, IN_FEATURES), jnp.float32)
    params = init_params(k_param, OUTPUT_DIM)

    out = contrastive_model_forward(feats, params)
    out = jax.block_until_ready(out)

    ref = reference_forward(feats, params)
    assert out.shape == (BATCH, OUTPUT_DIM)
    assert jnp.allclose(out, ref, atol=2e-3, rtol=2e-3), "mismatch vs reference"

    print("KERNEL_OK")
</pallas_src>

<mosaic_0001>
module attributes {stable_mosaic.version = 11 : i64} {
  func.func @projection_head_kernel(%arg0: i32, %arg1: memref<8x2048xf32, #tpu.memory_space<vmem>>, %arg2: memref<2048x512xbf16, #tpu.memory_space<vmem>>, %arg3: memref<1x512xf32, #tpu.memory_space<vmem>>, %arg4: memref<1x512xf32, #tpu.memory_space<vmem>>, %arg5: memref<512x128xf32, #tpu.memory_space<vmem>>, %arg6: memref<1x128xf32, #tpu.memory_space<vmem>>, %arg7: memref<8x128xf32, #tpu.memory_space<vmem>>) attributes {dimension_semantics = [#tpu.dimension_semantics<arbitrary>], iteration_bounds = array<i64: 1>, scalar_prefetch = 0 : i64, scratch_operands = 0 : i64, tpu.core_type = #tpu.core_type<tc>, window_params = [{pipeline_mode = #tpu.pipeline_mode<synchronous>, transform_indices = @transform_0, window_bounds = array<i64: 8, 2048>}, {pipeline_mode = #tpu.pipeline_mode<synchronous>, transform_indices = @transform_1, window_bounds = array<i64: 2048, 512>}, {pipeline_mode = #tpu.pipeline_mode<synchronous>, transform_indices = @transform_2, window_bounds = array<i64: 1, 512>}, {pipeline_mode = #tpu.pipeline_mode<synchronous>, transform_indices = @transform_3, window_bounds = array<i64: 1, 512>}, {pipeline_mode = #tpu.pipeline_mode<synchronous>, transform_indices = @transform_4, window_bounds = array<i64: 512, 128>}, {pipeline_mode = #tpu.pipeline_mode<synchronous>, transform_indices = @transform_5, window_bounds = array<i64: 1, 128>}, {pipeline_mode = #tpu.pipeline_mode<synchronous>, transform_indices = @transform_6, window_bounds = array<i64: 8, 128>}]} {
    %c0 = arith.constant 0 : index
    %c0_0 = arith.constant 0 : index
    %0 = vector.load %arg1[%c0, %c0_0] : memref<8x2048xf32, #tpu.memory_space<vmem>>, vector<8x2048xf32>
    %c0_1 = arith.constant 0 : index
    %c0_2 = arith.constant 0 : index
    %1 = vector.load %arg2[%c0_1, %c0_2] : memref<2048x512xbf16, #tpu.memory_space<vmem>>, vector<2048x512xbf16>
    %2 = arith.extf %1 : vector<2048x512xbf16> to vector<2048x512xf32>
    %cst = arith.constant dense<0.000000e+00> : vector<8x512xf32>
    %3 = tpu.matmul %0, %2, %cst {dimension_numbers = #tpu.dot_dimension_numbers<[1], [0], [0], [1], [0, 0, 1, 1], [], []>} : vector<8x2048xf32>, vector<2048x512xf32>, vector<8x512xf32> -> vector<8x512xf32>
    %cst_3 = arith.constant dense<0.000000e+00> : vector<512xf32>
    %4 = vector.multi_reduction <add>, %3, %cst_3 [0] : vector<8x512xf32> to vector<512xf32>
    %5 = vector.shape_cast %4 : vector<512xf32> to vector<1x512xf32>
    %cst_4 = arith.constant 8.000000e+00 : f32
    %6 = vector.broadcast %cst_4 : f32 to vector<1x512xf32>
    %7 = arith.divf %5, %6 : vector<1x512xf32>
    %8 = vector.broadcast %7 : vector<1x512xf32> to vector<8x512xf32>
    %9 = arith.subf %3, %8 : vector<8x512xf32>
    %10 = arith.mulf %9, %9 : vector<8x512xf32>
    %cst_5 = arith.constant dense<0.000000e+00> : vector<512xf32>
    %11 = vector.multi_reduction <add>, %10, %cst_5 [0] : vector<8x512xf32> to vector<512xf32>
    %12 = vector.shape_cast %11 : vector<512xf32> to vector<1x512xf32>
    %cst_6 = arith.constant 8.000000e+00 : f32
    %13 = vector.broadcast %cst_6 : f32 to vector<1x512xf32>
    %14 = arith.divf %12, %13 : vector<1x512xf32>
    %c0_7 = arith.constant 0 : index
    %c0_8 = arith.constant 0 : index
    %15 = vector.load %arg3[%c0_7, %c0_8] : memref<1x512xf32, #tpu.memory_space<vmem>>, vector<1x512xf32>
    %cst_9 = arith.constant 9.99999974E-6 : f32
    %16 = vector.broadcast %cst_9 : f32 to vector<1x512xf32>
    %17 = arith.addf %14, %16 : vector<1x512xf32>
    %18 = math.rsqrt %17 : vector<1x512xf32>
    %19 = arith.mulf %15, %18 : vector<1x512xf32>
    %20 = vector.broadcast %19 : vector<1x512xf32> to vector<8x512xf32>
    %21 = arith.mulf %9, %20 : vector<8x512xf32>
    %c0_10 = arith.constant 0 : index
    %c0_11 = arith.constant 0 : index
    %22 = vector.load %arg4[%c0_10, %c0_11] : memref<1x512xf32, #tpu.memory_space<vmem>>, vector<1x512xf32>
    %23 = vector.broadcast %22 : vector<1x512xf32> to vector<8x512xf32>
    %24 = arith.addf %21, %23 : vector<8x512xf32>
    %cst_12 = arith.constant 0.000000e+00 : f32
    %25 = vector.broadcast %cst_12 : f32 to vector<8x512xf32>
    %26 = arith.maximumf %24, %25 : vector<8x512xf32>
    %c0_13 = arith.constant 0 : index
    %c0_14 = arith.constant 0 : index
    %27 = vector.load %arg5[%c0_13, %c0_14] : memref<512x128xf32, #tpu.memory_space<vmem>>, vector<512x128xf32>
    %cst_15 = arith.constant dense<0.000000e+00> : vector<8x128xf32>
    %28 = tpu.matmul %26, %27, %cst_15 {dimension_numbers = #tpu.dot_dimension_numbers<[1], [0], [0], [1], [0, 0, 1, 1], [], []>} : vector<8x512xf32>, vector<512x128xf32>, vector<8x128xf32> -> vector<8x128xf32>
    %c0_16 = arith.constant 0 : index
    %c0_17 = arith.constant 0 : index
    %29 = vector.load %arg6[%c0_16, %c0_17] : memref<1x128xf32, #tpu.memory_space<vmem>>, vector<1x128xf32>
    %30 = vector.broadcast %29 : vector<1x128xf32> to vector<8x128xf32>
    %31 = arith.addf %28, %30 : vector<8x128xf32>
    %c0_18 = arith.constant 0 : index
    %c0_19 = arith.constant 0 : index
    %32 = vector.load %arg7[%c0_18, %c0_19] : memref<8x128xf32, #tpu.memory_space<vmem>>, vector<8x128xf32>
    tpu.vector_store %arg7[%c0_18, %c0_19], %31 {strides = array<i32>} : memref<8x128xf32, #tpu.memory_space<vmem>>, vector<8x128xf32>,
    return
  }
  func.func @transform_0(%arg0: i32) -> (i32, i32) {
    %c0_i32 = arith.constant 0 : i32
    %c0_i32_0 = arith.constant 0 : i32
    %c0_i32_1 = arith.constant 0 : i32
    return %c0_i32, %c0_i32_0 : i32, i32
  }
  func.func @transform_1(%arg0: i32) -> (i32, i32) {
    %c0_i32 = arith.constant 0 : i32
    %c0_i32_0 = arith.constant 0 : i32
    %c0_i32_1 = arith.constant 0 : i32
    return %c0_i32, %c0_i32_0 : i32, i32
  }
  func.func @transform_2(%arg0: i32) -> (i32, i32) {
    %c0_i32 = arith.constant 0 : i32
    %c0_i32_0 = arith.constant 0 : i32
    %c0_i32_1 = arith.constant 0 : i32
    return %c0_i32, %c0_i32_0 : i32, i32
  }
  func.func @transform_3(%arg0: i32) -> (i32, i32) {
    %c0_i32 = arith.constant 0 : i32
    %c0_i32_0 = arith.constant 0 : i32
    %c0_i32_1 = arith.constant 0 : i32
    return %c0_i32, %c0_i32_0 : i32, i32
  }
  func.func @transform_4(%arg0: i32) -> (i32, i32) {
    %c0_i32 = arith.constant 0 : i32
    %c0_i32_0 = arith.constant 0 : i32
    %c0_i32_1 = arith.constant 0 : i32
    return %c0_i32, %c0_i32_0 : i32, i32
  }
  func.func @transform_5(%arg0: i32) -> (i32, i32) {
    %c0_i32 = arith.constant 0 : i32
    %c0_i32_0 = arith.constant 0 : i32
    %c0_i32_1 = arith.constant 0 : i32
    return %c0_i32, %c0_i32_0 : i32, i32
  }
  func.func @transform_6(%arg0: i32) -> (i32, i32) {
    %c0_i32 = arith.constant 0 : i32
    %c0_i32_0 = arith.constant 0 : i32
    %c0_i32_1 = arith.constant 0 : i32
    return %c0_i32, %c0_i32_0 : i32, i32
  }
}

</mosaic_0001>

<bundles_post_ra>
// kernel: tpu_custom_call.1
= control target key start
LH: loop header
LB: loop body
LE: loop exit
PB: predicated region body
PF: predicated region fallthrough
CT: control target
= control target key end

     0   :  { %11 = vsyncpa [#allocation3], 0  ;;  %s5977_s0 = inlined_call_operand.hbm [shape: f32[8,2048], index: 0, kind: input, shape index: {}]   ;;  %s5978_s1 = inlined_call_operand.hbm [shape: bf16[2048,512], index: 1, kind: input, shape index: {}]   ;;  %s5979_s2 = inlined_call_operand.hbm [shape: f32[1,512], index: 2, kind: input, shape index: {}]   ;;  %s5980_s3 = inlined_call_operand.hbm [shape: f32[1,512], index: 3, kind: input, shape index: {}]   ;;  %s5981_s4 = inlined_call_operand.hbm [shape: f32[512,128], index: 4, kind: input, shape index: {}]   ;;  %s5982_s5 = inlined_call_operand.hbm [shape: f32[1,128], index: 5, kind: input, shape index: {}]   ;;  %s5983_s6 = inlined_call_operand.hbm [shape: f32[8,128], index: 6, kind: output, shape index: {}]  }
   0x1   :  { %12 = vsyncpa [#allocation6], 0 }
   0x2   :  { %13 = vsyncpa [#allocation9], 0 }
   0x3   :  { %14 = vsyncpa [#allocation12], 0 }
   0x4   :  { %15 = vsyncpa [#allocation4], 0  ;;  %s5826_s21 = smov [#allocation5]   ;;  %s5662_s25 = scalar_lea.hbm %s5978_s1, 65536 }
   0x5   :  { %s31_s22 = sshll.u32 %s5826_s21, 4  ;;  %p5663_p0 = scmp.ne.s32.totalorder %s5978_s1, %s5662_s25  ;;  %s32_s22 = int_to_ptr.vmem [resolvable:$true] %s31_s22 }
   0x6   :  { %p5666_p1 = scmp.lt.u32.totalorder %s5662_s25, %s5978_s1 }
   0x8   :  { %p5668_p2 = pnand %p5666_p1, %p5663_p0 }
   0xa   :  { %5671 = shalt.err (!%p5668_p2)
}
   0xb   :  { %s5672_s30 = scalar_lea.vmem %s32_s22, 65536  ;;  %p5677_p4 = scmp.lt.s32.totalorder %s32_s22, %s32_s22 }
   0xc   :  { %p5673_p3 = scmp.ne.s32.totalorder %s32_s22, %s5672_s30  ;;  %p5678_p5 = scmp.lt.s32.totalorder %s5672_s30, %s5672_s30 }
   0xe   :  { %p5679_p6 = por %p5678_p5, %p5677_p4 }
  0x10   :  { %p5680_p7 = pnand %p5679_p6, %p5673_p3 }
  0x12   :  { %5683 = shalt.err (!%p5680_p7)
}
  0x13   :  { %s5827_s7 = smov 256   ;;  %s5828_s8 = smov 16  }
  0x14   :  { %37 = dma.hbm_to_vmem [thread:$0]  %s5978_s1, 65536, %s32_s22, [#allocation6], %s5827_s7, %s5827_s7, %s5828_s8  }
  0x15   :  { %s5829_s11 = smov [#allocation8]   ;;  %s5830_s13 = smov [#allocation2]  }
  0x16   :  { %s54_s12 = sshll.u32 %s5829_s11, 4  ;;  %s22_s14 = sshll.u32 %s5830_s13, 4  ;;  %s55_s12 = int_to_ptr.vmem [resolvable:$true] %s54_s12  ;;  %s23_s14 = int_to_ptr.vmem [resolvable:$true] %s22_s14 }
  0x17   :  { %s5684_s17 = scalar_lea.hbm %s5980_s3, 64 }
  0x18   :  { %p5685_p8 = scmp.ne.s32.totalorder %s5980_s3, %s5684_s17  ;;  %p5688_p9 = scmp.lt.u32.totalorder %s5684_s17, %s5980_s3 }
  0x1a   :  { %p5690_p10 = pnand %p5688_p9, %p5685_p8 }
  0x1c   :  { %5693 = shalt.err (!%p5690_p10)
}
  0x1d   :  { %s5694_s1 = scalar_lea.vmem %s55_s12, 64  ;;  %p5699_p12 = scmp.lt.s32.totalorder %s55_s12, %s55_s12 }
  0x1e   :  { %p5695_p11 = scmp.ne.s32.totalorder %s55_s12, %s5694_s1  ;;  %p5700_p13 = scmp.lt.s32.totalorder %s5694_s1, %s5694_s1 }
  0x20   :  { %p5701_p0 = por %p5700_p13, %p5699_p12 }
  0x22   :  { %p5702_p1 = pnand %p5701_p0, %p5695_p11 }
  0x24   :  { %5705 = shalt.err (!%p5702_p1)
}
  0x25   :  { %57 = dma.hbm_to_vmem [thread:$0]  %s5980_s3, 64, %s55_s12, [#allocation9]  }
  0x26   :  { %s5706_s26 = scalar_lea.hbm %s5977_s0, 2048 }
  0x27   :  { %p5707_p2 = scmp.ne.s32.totalorder %s5977_s0, %s5706_s26  ;;  %p5710_p3 = scmp.lt.u32.totalorder %s5706_s26, %s5977_s0 }
  0x29   :  { %p5712_p4 = pnand %p5710_p3, %p5707_p2 }
  0x2b   :  { %5715 = shalt.err (!%p5712_p4)
}
  0x2c   :  { %s5716_s7 = scalar_lea.vmem %s23_s14, 2048  ;;  %p5721_p6 = scmp.lt.s32.totalorder %s23_s14, %s23_s14 }
  0x2d   :  { %p5717_p5 = scmp.ne.s32.totalorder %s23_s14, %s5716_s7  ;;  %p5722_p7 = scmp.lt.s32.totalorder %s5716_s7, %s5716_s7 }
  0x2f   :  { %p5723_p8 = por %p5722_p7, %p5721_p6 }
  0x31   :  { %p5724_p9 = pnand %p5723_p8, %p5717_p5 }
  0x33   :  { %5727 = shalt.err (!%p5724_p9)
}
  0x34   :  { %25 = dma.hbm_to_vmem [thread:$0]  %s5977_s0, 2048, %s23_s14, [#allocation3]  }
  0x35   :  { %s5831_s9 = smov [#allocation7]   ;;  %s5832_s11 = smov [#allocation10]  }
  0x36   :  { %s44_s10 = sshll.u32 %s5831_s9, 4  ;;  %s63_s12 = sshll.u32 %s5832_s11, 4  ;;  %s45_s10 = int_to_ptr.vmem [resolvable:$true] %s44_s10  ;;  %s64_s12 = int_to_ptr.vmem [resolvable:$true] %s63_s12 }
  0x37   :  { %s5728_s16 = scalar_lea.hbm %s5979_s2, 64 }
  0x38   :  { %p5729_p10 = scmp.ne.s32.totalorder %s5979_s2, %s5728_s16  ;;  %p5732_p11 = scmp.lt.u32.totalorder %s5728_s16, %s5979_s2 }
  0x3a   :  { %p5734_p12 = pnand %p5732_p11, %p5729_p10 }
  0x3c   :  { %5737 = shalt.err (!%p5734_p12)
}
  0x3d   :  { %s5738_s0 = scalar_lea.vmem %s45_s10, 64  ;;  %p5743_p0 = scmp.lt.s32.totalorder %s45_s10, %s45_s10 }
  0x3e   :  { %p5739_p13 = scmp.ne.s32.totalorder %s45_s10, %s5738_s0  ;;  %p5744_p1 = scmp.lt.s32.totalorder %s5738_s0, %s5738_s0 }
  0x40   :  { %p5745_p2 = por %p5744_p1, %p5743_p0 }
  0x42   :  { %p5746_p3 = pnand %p5745_p2, %p5739_p13 }
  0x44   :  { %5749 = shalt.err (!%p5746_p3)
}
  0x45   :  { %47 = dma.hbm_to_vmem [thread:$0]  %s5979_s2, 64, %s45_s10, [#allocation6]  }
  0x46   :  { %s5750_s23 = scalar_lea.hbm %s5981_s4, 8192 }
  0x47   :  { %p5751_p4 = scmp.ne.s32.totalorder %s5981_s4, %s5750_s23  ;;  %p5754_p5 = scmp.lt.u32.totalorder %s5750_s23, %s5981_s4 }
  0x49   :  { %p5756_p6 = pnand %p5754_p5, %p5751_p4 }
  0x4b   :  { %5759 = shalt.err (!%p5756_p6)
}
  0x4c   :  { %s5760_s28 = scalar_lea.vmem %s64_s12, 8192  ;;  %p5765_p8 = scmp.lt.s32.totalorder %s64_s12, %s64_s12 }
  0x4d   :  { %p5761_p7 = scmp.ne.s32.totalorder %s64_s12, %s5760_s28  ;;  %p5766_p9 = scmp.lt.s32.totalorder %s5760_s28, %s5760_s28 }
  0x4f   :  { %p5767_p10 = por %p5766_p9, %p5765_p8 }
  0x51   :  { %p5768_p11 = pnand %p5767_p10, %p5761_p7 }
  0x53   :  { %5771 = shalt.err (!%p5768_p11)
}
  0x54   :  { %s5833_s2 = smov 128   ;;  %s5834_s29 = smov 8  }
  0x55   :  { %69 = dma.hbm_to_vmem [thread:$0]  %s5981_s4, 8192, %s64_s12, [#allocation9], %s5833_s2, %s5833_s2, %s5834_s29  }
  0x56   :  { %s5835_s3 = smov [#allocation11]   ;;  %s5772_s11 = scalar_lea.hbm %s5982_s5, 16 }
  0x57   :  { %s76_s8 = sshll.u32 %s5835_s3, 4  ;;  %p5773_p12 = scmp.ne.s32.totalorder %s5982_s5, %s5772_s11  ;;  %s77_s8 = int_to_ptr.vmem [resolvable:$true] %s76_s8 }
  0x58   :  { %p5776_p13 = scmp.lt.u32.totalorder %s5772_s11, %s5982_s5 }
  0x5a   :  { %p5778_p0 = pnand %p5776_p13, %p5773_p12 }
  0x5c   :  { %5781 = shalt.err (!%p5778_p0)
}
  0x5d   :  { %s5782_s18 = scalar_lea.vmem %s77_s8, 16  ;;  %s5786_s4 = scalar_lea.vmem %s77_s8, 32 }
  0x5e   :  { %p5783_p1 = scmp.ne.s32.totalorder %s77_s8, %s5782_s18  ;;  %p5787_p2 = scmp.lt.s32.totalorder %s77_s8, %s77_s8 }
  0x5f   :  { %p5788_p3 = scmp.lt.s32.totalorder %s5786_s4, %s5782_s18 }
  0x61   :  { %p5789_p4 = por %p5788_p3, %p5787_p2 }
  0x63   :  { %p5790_p5 = pnand %p5789_p4, %p5783_p1 }
  0x65   :  { %5793 = shalt.err (!%p5790_p5)
}
  0x66   :  { %79 = dma.hbm_to_vmem [thread:$0]  %s5982_s5, 16, %s77_s8, [#allocation12]  }
  0x67   :  { %5816 = dma.done.wait [#allocation3], 2048  }
  0x68   :  { %5817 = vsyncadd [#allocation3], 4294965248 }
  0x69   :  { %5818 = dma.done.wait [#allocation6], 65600  }
  0x6a   :  { %5819 = vsyncadd [#allocation6], 4294901696 }
  0x6b   :  { %5820 = dma.done.wait [#allocation9], 8256  }
  0x6c   :  { %5821 = vsyncadd [#allocation9], 4294959040 }
  0x6d   :  { %5822 = dma.done.wait [#allocation12], 16  }
  0x6e   :  { %5823 = vsyncadd [#allocation12], 4294967280  ;;  %v4886_v0 = vld [vmem:[#allocation5 + $0x4] ss:$16 sps:$4 sm:$0xff]   ;;  %v4888_v1 = vld [vmem:[#allocation5 + $0xc] ss:$16 sps:$4 sm:$0xff]  }
  0x6f   :  { %3247 = vmatprep.subr.bf16.mxu0 %v4886_v0  ;;  %v4890_v2 = vld [vmem:[#allocation5] ss:$16 sps:$4 sm:$0xff]   ;;  %v4891_v3 = vld [vmem:[#allocation5 + $0x8] ss:$16 sps:$4 sm:$0xff]   ;;  %3759 = vmatprep.subr.bf16.mxu1 %v4888_v1  ;;  %v4892_v4 = vld [vmem:[#allocation5 + $0x24] ss:$16 sps:$4 sm:$0xff]  }
  0x70   :  { %3249 = vmatpush1.bf16.msra.mxu0 %v4890_v2  ;;  %3761 = vmatpush1.bf16.msra.mxu1 %v4891_v3  ;;  %v4894_v5 = vld [vmem:[#allocation5 + $0x2c] ss:$16 sps:$4 sm:$0xff]   ;;  %v4896_v6 = vld [vmem:[#allocation5 + $0x20] ss:$16 sps:$4 sm:$0xff]   ;;  %v4897_v7 = vld [vmem:[#allocation5 + $0x28] ss:$16 sps:$4 sm:$0xff]  }
  0x71   :  { %3251 = vmatprep.subr.bf16.mxu0 %v4892_v4  ;;  %3763 = vmatprep.subr.bf16.mxu1 %v4894_v5  ;;  %v4898_v8 = vld [vmem:[#allocation5 + $0x44] ss:$16 sps:$4 sm:$0xff]   ;;  %v4900_v9 = vld [vmem:[#allocation5 + $0x4c] ss:$16 sps:$4 sm:$0xff]   ;;  %v4902_v10 = vld [vmem:[#allocation5 + $0x40] ss:$16 sps:$4 sm:$0xff]  }
  0x72   :  { %v4903_v11 = vld [vmem:[#allocation5 + $0x48] ss:$16 sps:$4 sm:$0xff]   ;;  %v4904_v12 = vld [vmem:[#allocation5 + $0x64] ss:$16 sps:$4 sm:$0xff]   ;;  %v4906_v13 = vld [vmem:[#allocation5 + $0x6c] ss:$16 sps:$4 sm:$0xff]  }
  0x73   :  { %v4908_v14 = vld [vmem:[#allocation5 + $0x60] ss:$16 sps:$4 sm:$0xff]   ;;  %v4909_v15 = vld [vmem:[#allocation5 + $0x68] ss:$16 sps:$4 sm:$0xff]   ;;  %v4910_v16 = vld [vmem:[#allocation5 + $0x84] ss:$16 sps:$4 sm:$0xff]  }
  0x74   :  { %3253 = vmatpush1.bf16.msra.mxu0 %v4896_v6  ;;  %3765 = vmatpush1.bf16.msra.mxu1 %v4897_v7  ;;  %v4912_v17 = vld [vmem:[#allocation5 + $0x8c] ss:$16 sps:$4 sm:$0xff]   ;;  %v4914_v18 = vld [vmem:[#allocation5 + $0x80] ss:$16 sps:$4 sm:$0xff]   ;;  %v4915_v19 = vld [vmem:[#allocation5 + $0x88] ss:$16 sps:$4 sm:$0xff]  }
  0x75   :  { %3255 = vmatprep.subr.bf16.mxu0 %v4898_v8  ;;  %3767 = vmatprep.subr.bf16.mxu1 %v4900_v9  ;;  %v4916_v20 = vld [vmem:[#allocation5 + $0xa4] ss:$16 sps:$4 sm:$0xff]   ;;  %v4918_v21 = vld [vmem:[#allocation5 + $0xac] ss:$16 sps:$4 sm:$0xff]   ;;  %v4920_v22 = vld [vmem:[#allocation5 + $0xa0] ss:$16 sps:$4 sm:$0xff]  }
  0x76   :  { %v4921_v23 = vld [vmem:[#allocation5 + $0xa8] ss:$16 sps:$4 sm:$0xff]   ;;  %v4922_v24 = vld [vmem:[#allocation5 + $0xc4] ss:$16 sps:$4 sm:$0xff]   ;;  %v4924_v25 = vld [vmem:[#allocation5 + $0xcc] ss:$16 sps:$4 sm:$0xff]  }
  0x77   :  { %v4926_v26 = vld [vmem:[#allocation5 + $0xc0] ss:$16 sps:$4 sm:$0xff]   ;;  %v4927_v27 = vld [vmem:[#allocation5 + $0xc8] ss:$16 sps:$4 sm:$0xff]   ;;  %v4928_v28 = vld [vmem:[#allocation5 + $0xe4] ss:$16 sps:$4 sm:$0xff]  }
  0x78   :  { %3257 = vmatpush1.bf16.msra.mxu0 %v4902_v10  ;;  %3769 = vmatpush1.bf16.msra.mxu1 %v4903_v11  ;;  %v4930_v29 = vld [vmem:[#allocation5 + $0xec] ss:$16 sps:$4 sm:$0xff]   ;;  %v4932_v30 = vld [vmem:[#allocation5 + $0xe0] ss:$16 sps:$4 sm:$0xff]   ;;  %v4933_v31 = vld [vmem:[#allocation5 + $0xe8] ss:$16 sps:$4 sm:$0xff]  }
  0x79   :  { %3259 = vmatprep.subr.bf16.mxu0 %v4904_v12  ;;  %3771 = vmatprep.subr.bf16.mxu1 %v4906_v13  ;;  %v4934_v32 = vld [vmem:[#allocation5 + $0x104] ss:$16 sps:$4 sm:$0xff]   ;;  %v4936_v33 = vld [vmem:[#allocation5 + $0x10c] ss:$16 sps:$4 sm:$0xff]   ;;  %v4938_v34 = vld [vmem:[#allocation5 + $0x100] ss:$16 sps:$4 sm:$0xff]  }
  0x7a   :  { %v4939_v35 = vld [vmem:[#allocation5 + $0x108] ss:$16 sps:$4 sm:$0xff]   ;;  %v4940_v36 = vld [vmem:[#allocation5 + $0x124] ss:$16 sps:$4 sm:$0xff]   ;;  %v4942_v37 = vld [vmem:[#allocation5 + $0x12c] ss:$16 sps:$4 sm:$0xff]  }
  0x7b   :  { %v4944_v38 = vld [vmem:[#allocation5 + $0x120] ss:$16 sps:$4 sm:$0xff]   ;;  %v4945_v39 = vld [vmem:[#allocation5 + $0x128] ss:$16 sps:$4 sm:$0xff]   ;;  %v4946_v40 = vld [vmem:[#allocation5 + $0x144] ss:$16 sps:$4 sm:$0xff]  }
  0x7c   :  { %3261 = vmatpush1.bf16.msra.mxu0 %v4908_v14  ;;  %3773 = vmatpush1.bf16.msra.mxu1 %v4909_v15  ;;  %v4948_v41 = vld [vmem:[#allocation5 + $0x14c] ss:$16 sps:$4 sm:$0xff]   ;;  %v4950_v42 = vld [vmem:[#allocation5 + $0x140] ss:$16 sps:$4 sm:$0xff]   ;;  %v4951_v43 = vld [vmem:[#allocation5 + $0x148] ss:$16 sps:$4 sm:$0xff]  }
  0x7d   :  { %3263 = vmatprep.subr.bf16.mxu0 %v4910_v16  ;;  %3775 = vmatprep.subr.bf16.mxu1 %v4912_v17  ;;  %v4952_v44 = vld [vmem:[#allocation5 + $0x164] ss:$16 sps:$4 sm:$0xff]   ;;  %v4954_v45 = vld [vmem:[#allocation5 + $0x16c] ss:$16 sps:$4 sm:$0xff]   ;;  %v4956_v47 = vld [vmem:[#allocation5 + $0x160] ss:$16 sps:$4 sm:$0xff]  }
  0x7e   :  { %v99_v46 = vld [vmem:[#allocation2 + $0x8] sm:$0xff]  ;;  %v4958_v49 = vld [vmem:[#allocation5 + $0x184] ss:$16 sps:$4 sm:$0xff]   ;;  %v4962_v51 = vld [vmem:[#allocation5 + $0x180] ss:$16 sps:$4 sm:$0xff]   ;;  %s5837_s5 = smov [#allocation13]  }
  0x7f   :  { %1714 = vmatprep.mubr.f32.mxu0 %v99_v46  ;;  %2282 = vmatprep.mubr.f32.mxu1 %v99_v46  ;;  %v4957_v48 = vld [vmem:[#allocation5 + $0x168] ss:$16 sps:$4 sm:$0xff]   ;;  %v4960_v50 = vld [vmem:[#allocation5 + $0x18c] ss:$16 sps:$4 sm:$0xff]   ;;  %v4964_v53 = vld [vmem:[#allocation5 + $0x1a4] ss:$16 sps:$4 sm:$0xff]  }
  0x80   :  { %3265 = vmatpush1.bf16.msra.mxu0 %v4914_v18  ;;  %3777 = vmatpush1.bf16.msra.mxu1 %v4915_v19  ;;  %v4963_v52 = vld [vmem:[#allocation5 + $0x188] ss:$16 sps:$4 sm:$0xff]   ;;  %v4966_v54 = vld [vmem:[#allocation5 + $0x1ac] ss:$16 sps:$4 sm:$0xff]   ;;  %v4968_v55 = vld [vmem:[#allocation5 + $0x1a0] ss:$16 sps:$4 sm:$0xff]  }
  0x81   :  { %3267 = vmatprep.subr.bf16.mxu0 %v4916_v20  ;;  %3779 = vmatprep.subr.bf16.mxu1 %v4918_v21  ;;  %v4969_v56 = vld [vmem:[#allocation5 + $0x1a8] ss:$16 sps:$4 sm:$0xff]   ;;  %v4970_v57 = vld [vmem:[#allocation5 + $0x1c4] ss:$16 sps:$4 sm:$0xff]   ;;  %v4972_v58 = vld [vmem:[#allocation5 + $0x1cc] ss:$16 sps:$4 sm:$0xff]  }
  0x82   :  { %v4974_v59 = vld [vmem:[#allocation5 + $0x1c0] ss:$16 sps:$4 sm:$0xff]   ;;  %v4975_v60 = vld [vmem:[#allocation5 + $0x1c8] ss:$16 sps:$4 sm:$0xff]   ;;  %v4976_v61 = vld [vmem:[#allocation5 + $0x1e4] ss:$16 sps:$4 sm:$0xff]  }
  0x83   :  { %v4978_v62 = vld [vmem:[#allocation5 + $0x1ec] ss:$16 sps:$4 sm:$0xff]   ;;  %v4980_v63 = vld [vmem:[#allocation5 + $0x1e0] ss:$16 sps:$4 sm:$0xff]   ;;  %v4981_v0 = vld [vmem:[#allocation5 + $0x1e8] ss:$16 sps:$4 sm:$0xff]  }
  0x84   :  { %3269 = vmatpush1.bf16.msra.mxu0 %v4920_v22  ;;  %3781 = vmatpush1.bf16.msra.mxu1 %v4921_v23  ;;  %v4982_v1 = vld [vmem:[#allocation5 + $0x204] ss:$16 sps:$4 sm:$0xff]   ;;  %v4985_v2 = vld [vmem:[#allocation5 + $0x20c] ss:$16 sps:$4 sm:$0xff]   ;;  %v4984_v3 = vld [vmem:[#allocation5 + $0x200] ss:$16 sps:$4 sm:$0xff]  }
  0x85   :  { %3271 = vmatprep.subr.bf16.mxu0 %v4922_v24  ;;  %3783 = vmatprep.subr.bf16.mxu1 %v4924_v25  ;;  %v4987_v4 = vld [vmem:[#allocation5 + $0x208] ss:$16 sps:$4 sm:$0xff]   ;;  %v98_v5 = vld [vmem:[#allocation2] sm:$0xff]  ;;  %v4991_v7 = vld [vmem:[#allocation5 + $0x22c] ss:$16 sps:$4 sm:$0xff]   ;;  %s3163_s20 = sshll.u32 %s5837_s5, 4  ;;  %s3164_s20 = int_to_ptr.vmem [resolvable:$true] %s3163_s20 }
  0x86   :  { %v4988_v6 = vld [vmem:[#allocation5 + $0x224] ss:$16 sps:$4 sm:$0xff]   ;;  %v4990_v8 = vld [vmem:[#allocation5 + $0x220] ss:$16 sps:$4 sm:$0xff]   ;;  %v4993_v9 = vld [vmem:[#allocation5 + $0x228] ss:$16 sps:$4 sm:$0xff]   ;;  %p5799_p7 = scmp.lt.s32.totalorder %s3164_s20, %s3164_s20 }
  0x87   :  { %v4994_v10 = vld [vmem:[#allocation5 + $0x244] ss:$16 sps:$4 sm:$0xff]   ;;  %v4997_v11 = vld [vmem:[#allocation5 + $0x24c] ss:$16 sps:$4 sm:$0xff]   ;;  %v4996_v12 = vld [vmem:[#allocation5 + $0x240] ss:$16 sps:$4 sm:$0xff]  }
  0x88   :  { %3273 = vmatpush1.bf16.msra.mxu0 %v4926_v26  ;;  %3785 = vmatpush1.bf16.msra.mxu1 %v4927_v27  ;;  %v4999_v13 = vld [vmem:[#allocation5 + $0x248] ss:$16 sps:$4 sm:$0xff]   ;;  %v5000_v14 = vld [vmem:[#allocation5 + $0x264] ss:$16 sps:$4 sm:$0xff]   ;;  %v5003_v15 = vld [vmem:[#allocation5 + $0x26c] ss:$16 sps:$4 sm:$0xff]  }
  0x89   :  { %3275 = vmatprep.subr.bf16.mxu0 %v4928_v28  ;;  %3787 = vmatprep.subr.bf16.mxu1 %v4930_v29  ;;  %v5002_v16 = vld [vmem:[#allocation5 + $0x260] ss:$16 sps:$4 sm:$0xff]   ;;  %v5005_v17 = vld [vmem:[#allocation5 + $0x268] ss:$16 sps:$4 sm:$0xff]   ;;  %v5006_v18 = vld [vmem:[#allocation5 + $0x284] ss:$16 sps:$4 sm:$0xff]  }
  0x8a   :  { %v5009_v19 = vld [vmem:[#allocation5 + $0x28c] ss:$16 sps:$4 sm:$0xff]   ;;  %v5008_v20 = vld [vmem:[#allocation5 + $0x280] ss:$16 sps:$4 sm:$0xff]   ;;  %v5011_v21 = vld [vmem:[#allocation5 + $0x288] ss:$16 sps:$4 sm:$0xff]  }
  0x8b   :  { %v5012_v22 = vld [vmem:[#allocation5 + $0x2a4] ss:$16 sps:$4 sm:$0xff]   ;;  %v5015_v23 = vld [vmem:[#allocation5 + $0x2ac] ss:$16 sps:$4 sm:$0xff]   ;;  %v5014_v24 = vld [vmem:[#allocation5 + $0x2a0] ss:$16 sps:$4 sm:$0xff]  }
  0x8c   :  { %3277 = vmatpush1.bf16.msra.mxu0 %v4932_v30  ;;  %3789 = vmatpush1.bf16.msra.mxu1 %v4933_v31  ;;  %v5017_v25 = vld [vmem:[#allocation5 + $0x2a8] ss:$16 sps:$4 sm:$0xff]   ;;  %v5018_v26 = vld [vmem:[#allocation5 + $0x2c4] ss:$16 sps:$4 sm:$0xff]   ;;  %v5021_v27 = vld [vmem:[#allocation5 + $0x2cc] ss:$16 sps:$4 sm:$0xff]  }
  0x8d   :  { %3279 = vmatprep.subr.bf16.mxu0 %v4934_v32  ;;  %3791 = vmatprep.subr.bf16.mxu1 %v4936_v33  ;;  %v101_v28 = vld [vmem:[#allocation2 + $0x18] sm:$0xff]  ;;  %v5020_v29 = vld [vmem:[#allocation5 + $0x2c0] ss:$16 sps:$4 sm:$0xff]   ;;  %v5024_v31 = vld [vmem:[#allocation5 + $0x2e4] ss:$16 sps:$4 sm:$0xff]   ;;  %s5794_s0 = scalar_lea.vmem %s3164_s20, 128 }
  0x8e   :  { %v5023_v30 = vld [vmem:[#allocation5 + $0x2c8] ss:$16 sps:$4 sm:$0xff]   ;;  %v5027_v32 = vld [vmem:[#allocation5 + $0x2ec] ss:$16 sps:$4 sm:$0xff]   ;;  %v5026_v33 = vld [vmem:[#allocation5 + $0x2e0] ss:$16 sps:$4 sm:$0xff]   ;;  %p5795_p6 = scmp.ne.s32.totalorder %s3164_s20, %s5794_s0  ;;  %p5800_p8 = scmp.lt.s32.totalorder %s5794_s0, %s5794_s0 }
  0x8f   :  { %v5047_v46 = vld [vmem:[#allocation5 + $0x348] ss:$16 sps:$4 sm:$0xff]  }
  0x90   :  { %3281 = vmatpush1.bf16.msra.mxu0 %v4938_v34  ;;  %3793 = vmatpush1.bf16.msra.mxu1 %v4939_v35  ;;  %v5029_v34 = vld [vmem:[#allocation5 + $0x2e8] ss:$16 sps:$4 sm:$0xff]   ;;  %v5030_v35 = vld [vmem:[#allocation5 + $0x304] ss:$16 sps:$4 sm:$0xff]   ;;  %p5801_p9 = por %p5800_p8, %p5799_p7 }
  0x91   :  { %3283 = vmatprep.subr.bf16.mxu0 %v4940_v36  ;;  %3795 = vmatprep.subr.bf16.mxu1 %v4942_v37  ;;  %v5033_v36 = vld [vmem:[#allocation5 + $0x30c] ss:$16 sps:$4 sm:$0xff]   ;;  %v5032_v37 = vld [vmem:[#allocation5 + $0x300] ss:$16 sps:$4 sm:$0xff]  }
  0x92   :  { %p5802_p10 = pnand %p5801_p9, %p5795_p6 }
  0x94   :  { %3285 = vmatpush1.bf16.msra.mxu0 %v4944_v38  ;;  %3797 = vmatpush1.bf16.msra.mxu1 %v4945_v39  ;;  %v5035_v38 = vld [vmem:[#allocation5 + $0x308] ss:$16 sps:$4 sm:$0xff]   ;;  %v5036_v39 = vld [vmem:[#allocation5 + $0x324] ss:$16 sps:$4 sm:$0xff]  }
  0x95   :  { %3287 = vmatprep.subr.bf16.mxu0 %v4946_v40  ;;  %3799 = vmatprep.subr.bf16.mxu1 %v4948_v41  ;;  %v5039_v40 = vld [vmem:[#allocation5 + $0x32c] ss:$16 sps:$4 sm:$0xff]   ;;  %v5038_v41 = vld [vmem:[#allocation5 + $0x320] ss:$16 sps:$4 sm:$0xff]  }
  0x98   :  { %3289 = vmatpush1.bf16.msra.mxu0 %v4950_v42  ;;  %3801 = vmatpush1.bf16.msra.mxu1 %v4951_v43  ;;  %v5041_v42 = vld [vmem:[#allocation5 + $0x328] ss:$16 sps:$4 sm:$0xff]   ;;  %v5042_v43 = vld [vmem:[#allocation5 + $0x344] ss:$16 sps:$4 sm:$0xff]  }
  0x99   :  { %3291 = vmatprep.subr.bf16.mxu0 %v4952_v44  ;;  %3803 = vmatprep.subr.bf16.mxu1 %v4954_v45  ;;  %v5045_v44 = vld [vmem:[#allocation5 + $0x34c] ss:$16 sps:$4 sm:$0xff]   ;;  %v5044_v45 = vld [vmem:[#allocation5 + $0x340] ss:$16 sps:$4 sm:$0xff]  }
  0x9c   :  { %3293 = vmatpush1.bf16.msra.mxu0 %v4956_v47  ;;  %3805 = vmatpush1.bf16.msra.mxu1 %v4957_v48  ;;  %v5048_v47 = vld [vmem:[#allocation5 + $0x364] ss:$16 sps:$4 sm:$0xff]   ;;  %v5051_v48 = vld [vmem:[#allocation5 + $0x36c] ss:$16 sps:$4 sm:$0xff]  }
  0x9d   :  { %3295 = vmatprep.subr.bf16.mxu0 %v4958_v49  ;;  %3807 = vmatprep.subr.bf16.mxu1 %v4960_v50  ;;  %v5050_v49 = vld [vmem:[#allocation5 + $0x360] ss:$16 sps:$4 sm:$0xff]   ;;  %v5053_v50 = vld [vmem:[#allocation5 + $0x368] ss:$16 sps:$4 sm:$0xff]  }
  0xa0   :  { %3297 = vmatpush1.bf16.msra.mxu0 %v4962_v51  ;;  %3809 = vmatpush1.bf16.msra.mxu1 %v4963_v52  ;;  %v5054_v51 = vld [vmem:[#allocation5 + $0x384] ss:$16 sps:$4 sm:$0xff]   ;;  %v5057_v52 = vld [vmem:[#allocation5 + $0x38c] ss:$16 sps:$4 sm:$0xff]  }
  0xa1   :  { %3299 = vmatprep.subr.bf16.mxu0 %v4964_v53  ;;  %3811 = vmatprep.subr.bf16.mxu1 %v4966_v54  ;;  %v5056_v53 = vld [vmem:[#allocation5 + $0x380] ss:$16 sps:$4 sm:$0xff]   ;;  %v5059_v54 = vld [vmem:[#allocation5 + $0x388] ss:$16 sps:$4 sm:$0xff]  }
  0xa4   :  { %3301 = vmatpush1.bf16.msra.mxu0 %v4968_v55  ;;  %3813 = vmatpush1.bf16.msra.mxu1 %v4969_v56  ;;  %v5060_v55 = vld [vmem:[#allocation5 + $0x3a4] ss:$16 sps:$4 sm:$0xff]   ;;  %v5063_v56 = vld [vmem:[#allocation5 + $0x3ac] ss:$16 sps:$4 sm:$0xff]  }
  0xa5   :  { %3303 = vmatprep.subr.bf16.mxu0 %v4970_v57  ;;  %3815 = vmatprep.subr.bf16.mxu1 %v4972_v58  ;;  %v5062_v57 = vld [vmem:[#allocation5 + $0x3a0] ss:$16 sps:$4 sm:$0xff]   ;;  %v5065_v58 = vld [vmem:[#allocation5 + $0x3a8] ss:$16 sps:$4 sm:$0xff]  }
  0xa8   :  { %3305 = vmatpush1.bf16.msra.mxu0 %v4974_v59  ;;  %3817 = vmatpush1.bf16.msra.mxu1 %v4975_v60  ;;  %v5066_v59 = vld [vmem:[#allocation5 + $0x3c4] ss:$16 sps:$4 sm:$0xff]   ;;  %v5069_v60 = vld [vmem:[#allocation5 + $0x3cc] ss:$16 sps:$4 sm:$0xff]  }
  0xa9   :  { %3307 = vmatprep.subr.bf16.mxu0 %v4976_v61  ;;  %3819 = vmatprep.subr.bf16.mxu1 %v4978_v62  ;;  %v5068_v61 = vld [vmem:[#allocation5 + $0x3c0] ss:$16 sps:$4 sm:$0xff]   ;;  %v5071_v62 = vld [vmem:[#allocation5 + $0x3c8] ss:$16 sps:$4 sm:$0xff]  }
  0xac   :  { %3309 = vmatpush1.bf16.msra.mxu0 %v4980_v63  ;;  %3821 = vmatpush1.bf16.msra.mxu1 %v4981_v0  ;;  %v5072_v63 = vld [vmem:[#allocation5 + $0x3e4] ss:$16 sps:$4 sm:$0xff]   ;;  %v5075_v0 = vld [vmem:[#allocation5 + $0x3ec] ss:$16 sps:$4 sm:$0xff]  }
  0xad   :  { %3311 = vmatprep.subr.bf16.mxu0 %v4982_v1  ;;  %3823 = vmatprep.subr.bf16.mxu1 %v4985_v2  ;;  %v5074_v1 = vld [vmem:[#allocation5 + $0x3e0] ss:$16 sps:$4 sm:$0xff]   ;;  %v5077_v2 = vld [vmem:[#allocation5 + $0x3e8] ss:$16 sps:$4 sm:$0xff]  }
  0xaf   :  { %1715 = vmatmul.mubr.f32.vlgmr.msra.gmra.mrb[0].mxu0 %v98_v5  ;;  %2283 = vmatmul.mubr.f32.vlgmr.msra.gmra.mrb[0].mxu1 %v98_v5  ;;  %v5080_v5 = vld [vmem:[#allocation5 + $0x400] ss:$16 sps:$4 sm:$0xff]  }
  0xb0   :  { %3313 = vmatpush1.bf16.msra.mxu0 %v4984_v3  ;;  %3825 = vmatpush1.bf16.msra.mxu1 %v4987_v4  ;;  %v5078_v3 = vld [vmem:[#allocation5 + $0x404] ss:$16 sps:$4 sm:$0xff]   ;;  %v5081_v4 = vld [vmem:[#allocation5 + $0x40c] ss:$16 sps:$4 sm:$0xff]  }
  0xb1   :  { %3315 = vmatprep.subr.bf16.mxu0 %v4988_v6  ;;  %3827 = vmatprep.subr.bf16.mxu1 %v4991_v7  ;;  %v5083_v6 = vld [vmem:[#allocation5 + $0x408] ss:$16 sps:$4 sm:$0xff]   ;;  %v100_v7 = vld [vmem:[#allocation2 + $0x10] sm:$0xff] }
  0xb2   :  { %1785 = vmatprep.mubr.f32.mxu0 %v101_v28  ;;  %2353 = vmatprep.mubr.f32.mxu1 %v101_v28  ;;  %v5113_v28 = vld [vmem:[#allocation5 + $0x4a8] ss:$16 sps:$4 sm:$0xff]  }
  0xb4   :  { %3317 = vmatpush1.bf16.msra.mxu0 %v4990_v8  ;;  %3829 = vmatpush1.bf16.msra.mxu1 %v4993_v9  ;;  %v5084_v8 = vld [vmem:[#allocation5 + $0x424] ss:$16 sps:$4 sm:$0xff]   ;;  %v5087_v9 = vld [vmem:[#allocation5 + $0x42c] ss:$16 sps:$4 sm:$0xff]  }
  0xb5   :  { %3319 = vmatprep.subr.bf16.mxu0 %v4994_v10  ;;  %3831 = vmatprep.subr.bf16.mxu1 %v4997_v11  ;;  %v103_v10 = vld [vmem:[#allocation2 + $0x28] sm:$0xff]  ;;  %v5086_v11 = vld [vmem:[#allocation5 + $0x420] ss:$16 sps:$4 sm:$0xff]  }
  0xb8   :  { %3321 = vmatpush1.bf16.msra.mxu0 %v4996_v12  ;;  %3833 = vmatpush1.bf16.msra.mxu1 %v4999_v13  ;;  %v5089_v12 = vld [vmem:[#allocation5 + $0x428] ss:$16 sps:$4 sm:$0xff]   ;;  %v5090_v13 = vld [vmem:[#allocation5 + $0x444] ss:$16 sps:$4 sm:$0xff]  }
  0xb9   :  { %3323 = vmatprep.subr.bf16.mxu0 %v5000_v14  ;;  %3835 = vmatprep.subr.bf16.mxu1 %v5003_v15  ;;  %v5093_v14 = vld [vmem:[#allocation5 + $0x44c] ss:$16 sps:$4 sm:$0xff]   ;;  %v5092_v15 = vld [vmem:[#allocation5 + $0x440] ss:$16 sps:$4 sm:$0xff]  }
  0xbc   :  { %3325 = vmatpush1.bf16.msra.mxu0 %v5002_v16  ;;  %3837 = vmatpush1.bf16.msra.mxu1 %v5005_v17  ;;  %v5095_v16 = vld [vmem:[#allocation5 + $0x448] ss:$16 sps:$4 sm:$0xff]   ;;  %v5096_v17 = vld [vmem:[#allocation5 + $0x464] ss:$16 sps:$4 sm:$0xff]  }
  0xbd   :  { %3327 = vmatprep.subr.bf16.mxu0 %v5006_v18  ;;  %3839 = vmatprep.subr.bf16.mxu1 %v5009_v19  ;;  %v5099_v18 = vld [vmem:[#allocation5 + $0x46c] ss:$16 sps:$4 sm:$0xff]   ;;  %v5098_v19 = vld [vmem:[#allocation5 + $0x460] ss:$16 sps:$4 sm:$0xff]  }
  0xc0   :  { %3329 = vmatpush1.bf16.msra.mxu0 %v5008_v20  ;;  %3841 = vmatpush1.bf16.msra.mxu1 %v5011_v21  ;;  %v5101_v20 = vld [vmem:[#allocation5 + $0x468] ss:$16 sps:$4 sm:$0xff]   ;;  %v5102_v21 = vld [vmem:[#allocation5 + $0x484] ss:$16 sps:$4 sm:$0xff]  }
  0xc1   :  { %3331 = vmatprep.subr.bf16.mxu0 %v5012_v22  ;;  %3843 = vmatprep.subr.bf16.mxu1 %v5015_v23  ;;  %v5105_v22 = vld [vmem:[#allocation5 + $0x48c] ss:$16 sps:$4 sm:$0xff]   ;;  %v5104_v23 = vld [vmem:[#allocation5 + $0x480] ss:$16 sps:$4 sm:$0xff]  }
  0xc4   :  { %3333 = vmatpush1.bf16.msra.mxu0 %v5014_v24  ;;  %3845 = vmatpush1.bf16.msra.mxu1 %v5017_v25  ;;  %v5107_v24 = vld [vmem:[#allocation5 + $0x488] ss:$16 sps:$4 sm:$0xff]   ;;  %v5108_v25 = vld [vmem:[#allocation5 + $0x4a4] ss:$16 sps:$4 sm:$0xff]  }
  0xc5   :  { %3335 = vmatprep.subr.bf16.mxu0 %v5018_v26  ;;  %3847 = vmatprep.subr.bf16.mxu1 %v5021_v27  ;;  %v5111_v26 = vld [vmem:[#allocation5 + $0x4ac] ss:$16 sps:$4 sm:$0xff]   ;;  %v5110_v27 = vld [vmem:[#allocation5 + $0x4a0] ss:$16 sps:$4 sm:$0xff]  }
  0xc8   :  { %3337 = vmatpush1.bf16.msra.mxu0 %v5020_v29  ;;  %3849 = vmatpush1.bf16.msra.mxu1 %v5023_v30  ;;  %v5114_v29 = vld [vmem:[#allocation5 + $0x4c4] ss:$16 sps:$4 sm:$0xff]   ;;  %v5117_v30 = vld [vmem:[#allocation5 + $0x4cc] ss:$16 sps:$4 sm:$0xff]  }
  0xc9   :  { %3339 = vmatprep.subr.bf16.mxu0 %v5024_v31  ;;  %3851 = vmatprep.subr.bf16.mxu1 %v5027_v32  ;;  %v5116_v31 = vld [vmem:[#allocation5 + $0x4c0] ss:$16 sps:$4 sm:$0xff]   ;;  %v5119_v32 = vld [vmem:[#allocation5 + $0x4c8] ss:$16 sps:$4 sm:$0xff]  }
  0xcc   :  { %3341 = vmatpush1.bf16.msra.mxu0 %v5026_v33  ;;  %3853 = vmatpush1.bf16.msra.mxu1 %v5029_v34  ;;  %v5120_v33 = vld [vmem:[#allocation5 + $0x4e4] ss:$16 sps:$4 sm:$0xff]   ;;  %v5123_v34 = vld [vmem:[#allocation5 + $0x4ec] ss:$16 sps:$4 sm:$0xff]  }
  0xcd   :  { %3343 = vmatprep.subr.bf16.mxu0 %v5030_v35  ;;  %3855 = vmatprep.subr.bf16.mxu1 %v5033_v36  ;;  %v5122_v35 = vld [vmem:[#allocation5 + $0x4e0] ss:$16 sps:$4 sm:$0xff]   ;;  %v5125_v36 = vld [vmem:[#allocation5 + $0x4e8] ss:$16 sps:$4 sm:$0xff]  }
  0xd0   :  { %3345 = vmatpush1.bf16.msra.mxu0 %v5032_v37  ;;  %3857 = vmatpush1.bf16.msra.mxu1 %v5035_v38  ;;  %v5126_v37 = vld [vmem:[#allocation5 + $0x504] ss:$16 sps:$4 sm:$0xff]   ;;  %v5129_v38 = vld [vmem:[#allocation5 + $0x50c] ss:$16 sps:$4 sm:$0xff]  }
  0xd1   :  { %3347 = vmatprep.subr.bf16.mxu0 %v5036_v39  ;;  %3859 = vmatprep.subr.bf16.mxu1 %v5039_v40  ;;  %v5128_v39 = vld [vmem:[#allocation5 + $0x500] ss:$16 sps:$4 sm:$0xff]   ;;  %v5131_v40 = vld [vmem:[#allocation5 + $0x508] ss:$16 sps:$4 sm:$0xff]  }
  0xd4   :  { %3349 = vmatpush1.bf16.msra.mxu0 %v5038_v41  ;;  %3861 = vmatpush1.bf16.msra.mxu1 %v5041_v42  ;;  %v5132_v41 = vld [vmem:[#allocation5 + $0x524] ss:$16 sps:$4 sm:$0xff]   ;;  %v5135_v42 = vld [vmem:[#allocation5 + $0x52c] ss:$16 sps:$4 sm:$0xff]  }
  0xd5   :  { %3351 = vmatprep.subr.bf16.mxu0 %v5042_v43  ;;  %3863 = vmatprep.subr.bf16.mxu1 %v5045_v44  ;;  %v5134_v43 = vld [vmem:[#allocation5 + $0x520] ss:$16 sps:$4 sm:$0xff]   ;;  %v5137_v44 = vld [vmem:[#allocation5 + $0x528] ss:$16 sps:$4 sm:$0xff]  }
  0xd8   :  { %3353 = vmatpush1.bf16.msra.mxu0 %v5044_v45  ;;  %3865 = vmatpush1.bf16.msra.mxu1 %v5047_v46  ;;  %v5138_v45 = vld [vmem:[#allocation5 + $0x544] ss:$16 sps:$4 sm:$0xff]   ;;  %v5141_v46 = vld [vmem:[#allocation5 + $0x54c] ss:$16 sps:$4 sm:$0xff]  }
  0xd9   :  { %3355 = vmatprep.subr.bf16.mxu0 %v5048_v47  ;;  %3867 = vmatprep.subr.bf16.mxu1 %v5051_v48  ;;  %v5140_v47 = vld [vmem:[#allocation5 + $0x540] ss:$16 sps:$4 sm:$0xff]   ;;  %v5143_v48 = vld [vmem:[#allocation5 + $0x548] ss:$16 sps:$4 sm:$0xff]  }
  0xdc   :  { %3357 = vmatpush1.bf16.msra.mxu0 %v5050_v49  ;;  %3869 = vmatpush1.bf16.msra.mxu1 %v5053_v50  ;;  %v5144_v49 = vld [vmem:[#allocation5 + $0x564] ss:$16 sps:$4 sm:$0xff]   ;;  %v5147_v50 = vld [vmem:[#allocation5 + $0x56c] ss:$16 sps:$4 sm:$0xff]  }
  0xdd   :  { %3359 = vmatprep.subr.bf16.mxu0 %v5054_v51  ;;  %3871 = vmatprep.subr.bf16.mxu1 %v5057_v52  ;;  %v5146_v51 = vld [vmem:[#allocation5 + $0x560] ss:$16 sps:$4 sm:$0xff]   ;;  %v5149_v52 = vld [vmem:[#allocation5 + $0x568] ss:$16 sps:$4 sm:$0xff]  }
  0xe0   :  { %3361 = vmatpush1.bf16.msra.mxu0 %v5056_v53  ;;  %3873 = vmatpush1.bf16.msra.mxu1 %v5059_v54  ;;  %v5150_v53 = vld [vmem:[#allocation5 + $0x584] ss:$16 sps:$4 sm:$0xff]   ;;  %v5153_v54 = vld [vmem:[#allocation5 + $0x58c] ss:$16 sps:$4 sm:$0xff]  }
  0xe1   :  { %3363 = vmatprep.subr.bf16.mxu0 %v5060_v55  ;;  %3875 = vmatprep.subr.bf16.mxu1 %v5063_v56  ;;  %v5152_v55 = vld [vmem:[#allocation5 + $0x580] ss:$16 sps:$4 sm:$0xff]   ;;  %v5155_v56 = vld [vmem:[#allocation5 + $0x588] ss:$16 sps:$4 sm:$0xff]  }
  0xe4   :  { %3365 = vmatpush1.bf16.msra.mxu0 %v5062_v57  ;;  %3877 = vmatpush1.bf16.msra.mxu1 %v5065_v58  ;;  %v5156_v57 = vld [vmem:[#allocation5 + $0x5a4] ss:$16 sps:$4 sm:$0xff]   ;;  %v5159_v58 = vld [vmem:[#allocation5 + $0x5ac] ss:$16 sps:$4 sm:$0xff]  }
  0xe5   :  { %3367 = vmatprep.subr.bf16.mxu0 %v5066_v59  ;;  %3879 = vmatprep.subr.bf16.mxu1 %v5069_v60  ;;  %v5158_v59 = vld [vmem:[#allocation5 + $0x5a0] ss:$16 sps:$4 sm:$0xff]   ;;  %v5161_v60 = vld [vmem:[#allocation5 + $0x5a8] ss:$16 sps:$4 sm:$0xff]  }
  0xe8   :  { %3369 = vmatpush1.bf16.msra.mxu0 %v5068_v61  ;;  %3881 = vmatpush1.bf16.msra.mxu1 %v5071_v62  ;;  %v5162_v61 = vld [vmem:[#allocation5 + $0x5c4] ss:$16 sps:$4 sm:$0xff]   ;;  %v5165_v62 = vld [vmem:[#allocation5 + $0x5cc] ss:$16 sps:$4 sm:$0xff]  }
  0xe9   :  { %3371 = vmatprep.subr.bf16.mxu0 %v5072_v63  ;;  %3883 = vmatprep.subr.bf16.mxu1 %v5075_v0  ;;  %v5164_v63 = vld [vmem:[#allocation5 + $0x5c0] ss:$16 sps:$4 sm:$0xff]   ;;  %v5167_v0 = vld [vmem:[#allocation5 + $0x5c8] ss:$16 sps:$4 sm:$0xff]  }
  0xec   :  { %3373 = vmatpush1.bf16.msra.mxu0 %v5074_v1  ;;  %3885 = vmatpush1.bf16.msra.mxu1 %v5077_v2  ;;  %v5168_v1 = vld [vmem:[#allocation5 + $0x5e4] ss:$16 sps:$4 sm:$0xff]   ;;  %v5171_v2 = vld [vmem:[#allocation5 + $0x5ec] ss:$16 sps:$4 sm:$0xff]  }
  0xed   :  { %3375 = vmatprep.subr.bf16.mxu0 %v5078_v3  ;;  %3887 = vmatprep.subr.bf16.mxu1 %v5081_v4  ;;  %v5170_v3 = vld [vmem:[#allocation5 + $0x5e0] ss:$16 sps:$4 sm:$0xff]   ;;  %v5173_v4 = vld [vmem:[#allocation5 + $0x5e8] ss:$16 sps:$4 sm:$0xff]  }
  0xef   :  { %1786 = vmatmul.mubr.f32.vlgmr.msra.gmra.mrb[0].mxu0 %v100_v7  ;;  %2354 = vmatmul.mubr.f32.vlgmr.msra.gmra.mrb[0].mxu1 %v100_v7  ;;  %v5176_v7 = vld [vmem:[#allocation5 + $0x600] ss:$16 sps:$4 sm:$0xff]  }
  0xf0   :  { %3377 = vmatpush1.bf16.msra.mxu0 %v5080_v5  ;;  %3889 = vmatpush1.bf16.msra.mxu1 %v5083_v6  ;;  %v5174_v5 = vld [vmem:[#allocation5 + $0x604] ss:$16 sps:$4 sm:$0xff]   ;;  %v5177_v6 = vld [vmem:[#allocation5 + $0x60c] ss:$16 sps:$4 sm:$0xff]  }
  0xf1   :  { %3379 = vmatprep.subr.bf16.mxu0 %v5084_v8  ;;  %3891 = vmatprep.subr.bf16.mxu1 %v5087_v9  ;;  %v5179_v8 = vld [vmem:[#allocation5 + $0x608] ss:$16 sps:$4 sm:$0xff]   ;;  %v102_v9 = vld [vmem:[#allocation2 + $0x20] sm:$0xff] }
  0xf2   :  { %1856 = vmatprep.mubr.f32.mxu0 %v103_v10  ;;  %2424 = vmatprep.mubr.f32.mxu1 %v103_v10  ;;  %v5180_v10 = vld [vmem:[#allocation5 + $0x624] ss:$16 sps:$4 sm:$0xff]  }
  0xf4   :  { %3381 = vmatpush1.bf16.msra.mxu0 %v5086_v11  ;;  %3893 = vmatpush1.bf16.msra.mxu1 %v5089_v12  ;;  %v5183_v11 = vld [vmem:[#allocation5 + $0x62c] ss:$16 sps:$4 sm:$0xff]   ;;  %v5182_v12 = vld [vmem:[#allocation5 + $0x620] ss:$16 sps:$4 sm:$0xff]  }
  0xf5   :  { %3383 = vmatprep.subr.bf16.mxu0 %v5090_v13  ;;  %3895 = vmatprep.subr.bf16.mxu1 %v5093_v14  ;;  %v5185_v13 = vld [vmem:[#allocation5 + $0x628] ss:$16 sps:$4 sm:$0xff]  }
  0xf6   :  { %v105_v14 = vld [vmem:[#allocation2 + $0x38] sm:$0xff] }
  0xf8   :  { %3385 = vmatpush1.bf16.msra.mxu0 %v5092_v15  ;;  %3897 = vmatpush1.bf16.msra.mxu1 %v5095_v16  ;;  %v5186_v15 = vld [vmem:[#allocation5 + $0x644] ss:$16 sps:$4 sm:$0xff]   ;;  %v5189_v16 = vld [vmem:[#allocation5 + $0x64c] ss:$16 sps:$4 sm:$0xff]  }
  0xf9   :  { %3387 = vmatprep.subr.bf16.mxu0 %v5096_v17  ;;  %3899 = vmatprep.subr.bf16.mxu1 %v5099_v18  ;;  %v5188_v17 = vld [vmem:[#allocation5 + $0x640] ss:$16 sps:$4 sm:$0xff]   ;;  %v5191_v18 = vld [vmem:[#allocation5 + $0x648] ss:$16 sps:$4 sm:$0xff]  }
  0xfc   :  { %3389 = vmatpush1.bf16.msra.mxu0 %v5098_v19  ;;  %3901 = vmatpush1.bf16.msra.mxu1 %v5101_v20  ;;  %v5192_v19 = vld [vmem:[#allocation5 + $0x664] ss:$16 sps:$4 sm:$0xff]   ;;  %v5195_v20 = vld [vmem:[#allocation5 + $0x66c] ss:$16 sps:$4 sm:$0xff]  }
  0xfd   :  { %3391 = vmatprep.subr.bf16.mxu0 %v5102_v21  ;;  %3903 = vmatprep.subr.bf16.mxu1 %v5105_v22  ;;  %v5194_v21 = vld [vmem:[#allocation5 + $0x660] ss:$16 sps:$4 sm:$0xff]   ;;  %v5197_v22 = vld [vmem:[#allocation5 + $0x668] ss:$16 sps:$4 sm:$0xff]  }
 0x100   :  { %3393 = vmatpush1.bf16.msra.mxu0 %v5104_v23  ;;  %3905 = vmatpush1.bf16.msra.mxu1 %v5107_v24  ;;  %v5198_v23 = vld [vmem:[#allocation5 + $0x684] ss:$16 sps:$4 sm:$0xff]   ;;  %v5201_v24 = vld [vmem:[#allocation5 + $0x68c] ss:$16 sps:$4 sm:$0xff]  }
 0x101   :  { %3395 = vmatprep.subr.bf16.mxu0 %v5108_v25  ;;  %3907 = vmatprep.subr.bf16.mxu1 %v5111_v26  ;;  %v5200_v25 = vld [vmem:[#allocation5 + $0x680] ss:$16 sps:$4 sm:$0xff]   ;;  %v5203_v26 = vld [vmem:[#allocation5 + $0x688] ss:$16 sps:$4 sm:$0xff]  }
 0x104   :  { %3397 = vmatpush1.bf16.msra.mxu0 %v5110_v27  ;;  %3909 = vmatpush1.bf16.msra.mxu1 %v5113_v28  ;;  %v5204_v27 = vld [vmem:[#allocation5 + $0x6a4] ss:$16 sps:$4 sm:$0xff]   ;;  %v5207_v28 = vld [vmem:[#allocation5 + $0x6ac] ss:$16 sps:$4 sm:$0xff]  }
 0x105   :  { %3399 = vmatprep.subr.bf16.mxu0 %v5114_v29  ;;  %3911 = vmatprep.subr.bf16.mxu1 %v5117_v30  ;;  %v5206_v29 = vld [vmem:[#allocation5 + $0x6a0] ss:$16 sps:$4 sm:$0xff]   ;;  %v5209_v30 = vld [vmem:[#allocation5 + $0x6a8] ss:$16 sps:$4 sm:$0xff]  }
 0x108   :  { %3401 = vmatpush1.bf16.msra.mxu0 %v5116_v31  ;;  %3913 = vmatpush1.bf16.msra.mxu1 %v5119_v32  ;;  %v5210_v31 = vld [vmem:[#allocation5 + $0x6c4] ss:$16 sps:$4 sm:$0xff]   ;;  %v5213_v32 = vld [vmem:[#allocation5 + $0x6cc] ss:$16 sps:$4 sm:$0xff]  }
 0x109   :  { %3403 = vmatprep.subr.bf16.mxu0 %v5120_v33  ;;  %3915 = vmatprep.subr.bf16.mxu1 %v5123_v34  ;;  %v5212_v33 = vld [vmem:[#allocation5 + $0x6c0] ss:$16 sps:$4 sm:$0xff]   ;;  %v5215_v34 = vld [vmem:[#allocation5 + $0x6c8] ss:$16 sps:$4 sm:$0xff]  }
 0x10c   :  { %3405 = vmatpush1.bf16.msra.mxu0 %v5122_v35  ;;  %3917 = vmatpush1.bf16.msra.mxu1 %v5125_v36  ;;  %v5216_v35 = vld [vmem:[#allocation5 + $0x6e4] ss:$16 sps:$4 sm:$0xff]   ;;  %v5219_v36 = vld [vmem:[#allocation5 + $0x6ec] ss:$16 sps:$4 sm:$0xff]  }
 0x10d   :  { %3407 = vmatprep.subr.bf16.mxu0 %v5126_v37  ;;  %3919 = vmatprep.subr.bf16.mxu1 %v5129_v38  ;;  %v5218_v37 = vld [vmem:[#allocation5 + $0x6e0] ss:$16 sps:$4 sm:$0xff]   ;;  %v5221_v38 = vld [vmem:[#allocation5 + $0x6e8] ss:$16 sps:$4 sm:$0xff]  }
 0x110   :  { %3409 = vmatpush1.bf16.msra.mxu0 %v5128_v39  ;;  %3921 = vmatpush1.bf16.msra.mxu1 %v5131_v40  ;;  %v5222_v39 = vld [vmem:[#allocation5 + $0x704] ss:$16 sps:$4 sm:$0xff]   ;;  %v5225_v40 = vld [vmem:[#allocation5 + $0x70c] ss:$16 sps:$4 sm:$0xff]  }
 0x111   :  { %3411 = vmatprep.subr.bf16.mxu0 %v5132_v41  ;;  %3923 = vmatprep.subr.bf16.mxu1 %v5135_v42  ;;  %v5224_v41 = vld [vmem:[#allocation5 + $0x700] ss:$16 sps:$4 sm:$0xff]   ;;  %v5227_v42 = vld [vmem:[#allocation5 + $0x708] ss:$16 sps:$4 sm:$0xff]  }
 0x114   :  { %3413 = vmatpush1.bf16.msra.mxu0 %v5134_v43  ;;  %3925 = vmatpush1.bf16.msra.mxu1 %v5137_v44  ;;  %v5228_v43 = vld [vmem:[#allocation5 + $0x724] ss:$16 sps:$4 sm:$0xff]   ;;  %v5231_v44 = vld [vmem:[#allocation5 + $0x72c] ss:$16 sps:$4 sm:$0xff]  }
 0x115   :  { %3415 = vmatprep.subr.bf16.mxu0 %v5138_v45  ;;  %3927 = vmatprep.subr.bf16.mxu1 %v5141_v46  ;;  %v5230_v45 = vld [vmem:[#allocation5 + $0x720] ss:$16 sps:$4 sm:$0xff]   ;;  %v5233_v46 = vld [vmem:[#allocation5 + $0x728] ss:$16 sps:$4 sm:$0xff]  }
 0x118   :  { %3417 = vmatpush1.bf16.msra.mxu0 %v5140_v47  ;;  %3929 = vmatpush1.bf16.msra.mxu1 %v5143_v48  ;;  %v5234_v47 = vld [vmem:[#allocation5 + $0x744] ss:$16 sps:$4 sm:$0xff]   ;;  %v5237_v48 = vld [vmem:[#allocation5 + $0x74c] ss:$16 sps:$4 sm:$0xff]  }
 0x119   :  { %3419 = vmatprep.subr.bf16.mxu0 %v5144_v49  ;;  %3931 = vmatprep.subr.bf16.mxu1 %v5147_v50  ;;  %v5236_v49 = vld [vmem:[#allocation5 + $0x740] ss:$16 sps:$4 sm:$0xff]   ;;  %v5239_v50 = vld [vmem:[#allocation5 + $0x748] ss:$16 sps:$4 sm:$0xff]  }
 0x11c   :  { %3421 = vmatpush1.bf16.msra.mxu0 %v5146_v51  ;;  %3933 = vmatpush1.bf16.msra.mxu1 %v5149_v52  ;;  %v5240_v51 = vld [vmem:[#allocation5 + $0x764] ss:$16 sps:$4 sm:$0xff]   ;;  %v5243_v52 = vld [vmem:[#allocation5 + $0x76c] ss:$16 sps:$4 sm:$0xff]  }
 0x11d   :  { %3423 = vmatprep.subr.bf16.mxu0 %v5150_v53  ;;  %3935 = vmatprep.subr.bf16.mxu1 %v5153_v54  ;;  %v5242_v53 = vld [vmem:[#allocation5 + $0x760] ss:$16 sps:$4 sm:$0xff]   ;;  %v5245_v54 = vld [vmem:[#allocation5 + $0x768] ss:$16 sps:$4 sm:$0xff]  }
 0x120   :  { %3425 = vmatpush1.bf16.msra.mxu0 %v5152_v55  ;;  %3937 = vmatpush1.bf16.msra.mxu1 %v5155_v56  ;;  %v5246_v55 = vld [vmem:[#allocation5 + $0x784] ss:$16 sps:$4 sm:$0xff]   ;;  %v5249_v56 = vld [vmem:[#allocation5 + $0x78c] ss:$16 sps:$4 sm:$0xff]  }
 0x121   :  { %3427 = vmatprep.subr.bf16.mxu0 %v5156_v57  ;;  %3939 = vmatprep.subr.bf16.mxu1 %v5159_v58  ;;  %v5248_v57 = vld [vmem:[#allocation5 + $0x780] ss:$16 sps:$4 sm:$0xff]   ;;  %v5251_v58 = vld [vmem:[#allocation5 + $0x788] ss:$16 sps:$4 sm:$0xff]  }
 0x124   :  { %3429 = vmatpush1.bf16.msra.mxu0 %v5158_v59  ;;  %3941 = vmatpush1.bf16.msra.mxu1 %v5161_v60  ;;  %v5252_v59 = vld [vmem:[#allocation5 + $0x7a4] ss:$16 sps:$4 sm:$0xff]   ;;  %v5255_v60 = vld [vmem:[#allocation5 + $0x7ac] ss:$16 sps:$4 sm:$0xff]  }
 0x125   :  { %3431 = vmatprep.subr.bf16.mxu0 %v5162_v61  ;;  %3943 = vmatprep.subr.bf16.mxu1 %v5165_v62  ;;  %v5254_v61 = vld [vmem:[#allocation5 + $0x7a0] ss:$16 sps:$4 sm:$0xff]   ;;  %v5257_v62 = vld [vmem:[#allocation5 + $0x7a8] ss:$16 sps:$4 sm:$0xff]  }
 0x128   :  { %3433 = vmatpush1.bf16.msra.mxu0 %v5164_v63  ;;  %3945 = vmatpush1.bf16.msra.mxu1 %v5167_v0  ;;  %v5258_v63 = vld [vmem:[#allocation5 + $0x7c4] ss:$16 sps:$4 sm:$0xff]   ;;  %v5261_v0 = vld [vmem:[#allocation5 + $0x7cc] ss:$16 sps:$4 sm:$0xff]  }
 0x129   :  { %3435 = vmatprep.subr.bf16.mxu0 %v5168_v1  ;;  %3947 = vmatprep.subr.bf16.mxu1 %v5171_v2  ;;  %v5260_v1 = vld [vmem:[#allocation5 + $0x7c0] ss:$16 sps:$4 sm:$0xff]   ;;  %v5263_v2 = vld [vmem:[#allocation5 + $0x7c8] ss:$16 sps:$4 sm:$0xff]  }
 0x12c   :  { %3437 = vmatpush1.bf16.msra.mxu0 %v5170_v3  ;;  %3949 = vmatpush1.bf16.msra.mxu1 %v5173_v4  ;;  %v5264_v3 = vld [vmem:[#allocation5 + $0x7e4] ss:$16 sps:$4 sm:$0xff]   ;;  %v5267_v4 = vld [vmem:[#allocation5 + $0x7ec] ss:$16 sps:$4 sm:$0xff]  }
 0x12d   :  { %3439 = vmatprep.subr.bf16.mxu0 %v5174_v5  ;;  %3951 = vmatprep.subr.bf16.mxu1 %v5177_v6  ;;  %v5266_v5 = vld [vmem:[#allocation5 + $0x7e0] ss:$16 sps:$4 sm:$0xff]   ;;  %v5269_v6 = vld [vmem:[#allocation5 + $0x7e8] ss:$16 sps:$4 sm:$0xff]  }
 0x12f   :  { %1857 = vmatmul.mubr.f32.vlgmr.msra.gmra.mrb[0].mxu0 %v102_v9  ;;  %2425 = vmatmul.mubr.f32.vlgmr.msra.gmra.mrb[0].mxu1 %v102_v9  ;;  %v5272_v9 = vld [vmem:[#allocation5 + $0x800] ss:$16 sps:$4 sm:$0xff]  }
 0x130   :  { %3441 = vmatpush1.bf16.msra.mxu0 %v5176_v7  ;;  %3953 = vmatpush1.bf16.msra.mxu1 %v5179_v8  ;;  %v5270_v7 = vld [vmem:[#allocation5 + $0x804] ss:$16 sps:$4 sm:$0xff]   ;;  %v5273_v8 = vld [vmem:[#allocation5 + $0x80c] ss:$16 sps:$4 sm:$0xff]  }
 0x131   :  { %3443 = vmatprep.subr.bf16.mxu0 %v5180_v10  ;;  %3955 = vmatprep.subr.bf16.mxu1 %v5183_v11  ;;  %v5275_v10 = vld [vmem:[#allocation5 + $0x808] ss:$16 sps:$4 sm:$0xff]   ;;  %v104_v11 = vld [vmem:[#allocation2 + $0x30] sm:$0xff] }
 0x132   :  { %1927 = vmatprep.mubr.f32.mxu0 %v105_v14  ;;  %2495 = vmatprep.mubr.f32.mxu1 %v105_v14  ;;  %v5278_v14 = vld [vmem:[#allocation5 + $0x820] ss:$16 sps:$4 sm:$0xff]  }
 0x134   :  { %3445 = vmatpush1.bf16.msra.mxu0 %v5182_v12  ;;  %3957 = vmatpush1.bf16.msra.mxu1 %v5185_v13  ;;  %v5276_v12 = vld [vmem:[#allocation5 + $0x824] ss:$16 sps:$4 sm:$0xff]   ;;  %v5279_v13 = vld [vmem:[#allocation5 + $0x82c] ss:$16 sps:$4 sm:$0xff]  }
 0x135   :  { %3447 = vmatprep.subr.bf16.mxu0 %v5186_v15  ;;  %3959 = vmatprep.subr.bf16.mxu1 %v5189_v16  ;;  %v107_v15 = vld [vmem:[#allocation2 + $0x48] sm:$0xff] }
 0x136   :  { %v5281_v16 = vld [vmem:[#allocation5 + $0x828] ss:$16 sps:$4 sm:$0xff]  }
 0x138   :  { %3449 = vmatpush1.bf16.msra.mxu0 %v5188_v17  ;;  %3961 = vmatpush1.bf16.msra.mxu1 %v5191_v18  ;;  %v5282_v17 = vld [vmem:[#allocation5 + $0x844] ss:$16 sps:$4 sm:$0xff]   ;;  %v5285_v18 = vld [vmem:[#allocation5 + $0x84c] ss:$16 sps:$4 sm:$0xff]  }
 0x139   :  { %3451 = vmatprep.subr.bf16.mxu0 %v5192_v19  ;;  %3963 = vmatprep.subr.bf16.mxu1 %v5195_v20  ;;  %v5284_v19 = vld [vmem:[#allocation5 + $0x840] ss:$16 sps:$4 sm:$0xff]   ;;  %v5287_v20 = vld [vmem:[#allocation5 + $0x848] ss:$16 sps:$4 sm:$0xff]  }
 0x13c   :  { %3453 = vmatpush1.bf16.msra.mxu0 %v5194_v21  ;;  %3965 = vmatpush1.bf16.msra.mxu1 %v5197_v22  ;;  %v5288_v21 = vld [vmem:[#allocation5 + $0x864] ss:$16 sps:$4 sm:$0xff]   ;;  %v5291_v22 = vld [vmem:[#allocation5 + $0x86c] ss:$16 sps:$4 sm:$0xff]  }
 0x13d   :  { %3455 = vmatprep.subr.bf16.mxu0 %v5198_v23  ;;  %3967 = vmatprep.subr.bf16.mxu1 %v5201_v24  ;;  %v5290_v23 = vld [vmem:[#allocation5 + $0x860] ss:$16 sps:$4 sm:$0xff]   ;;  %v5293_v24 = vld [vmem:[#allocation5 + $0x868] ss:$16 sps:$4 sm:$0xff]  }
 0x140   :  { %3457 = vmatpush1.bf16.msra.mxu0 %v5200_v25  ;;  %3969 = vmatpush1.bf16.msra.mxu1 %v5203_v26  ;;  %v5294_v25 = vld [vmem:[#allocation5 + $0x884] ss:$16 sps:$4 sm:$0xff]   ;;  %v5297_v26 = vld [vmem:[#allocation5 + $0x88c] ss:$16 sps:$4 sm:$0xff]  }
 0x141   :  { %3459 = vmatprep.subr.bf16.mxu0 %v5204_v27  ;;  %3971 = vmatprep.subr.bf16.mxu1 %v5207_v28  ;;  %v5296_v27 = vld [vmem:[#allocation5 + $0x880] ss:$16 sps:$4 sm:$0xff]   ;;  %v5299_v28 = vld [vmem:[#allocation5 + $0x888] ss:$16 sps:$4 sm:$0xff]  }
 0x144   :  { %3461 = vmatpush1.bf16.msra.mxu0 %v5206_v29  ;;  %3973 = vmatpush1.bf16.msra.mxu1 %v5209_v30  ;;  %v5300_v29 = vld [vmem:[#allocation5 + $0x8a4] ss:$16 sps:$4 sm:$0xff]   ;;  %v5303_v30 = vld [vmem:[#allocation5 + $0x8ac] ss:$16 sps:$4 sm:$0xff]  }
 0x145   :  { %3463 = vmatprep.subr.bf16.mxu0 %v5210_v31  ;;  %3975 = vmatprep.subr.bf16.mxu1 %v5213_v32  ;;  %v5302_v31 = vld [vmem:[#allocation5 + $0x8a0] ss:$16 sps:$4 sm:$0xff]   ;;  %v5305_v32 = vld [vmem:[#allocation5 + $0x8a8] ss:$16 sps:$4 sm:$0xff]  }
 0x148   :  { %3465 = vmatpush1.bf16.msra.mxu0 %v5212_v33  ;;  %3977 = vmatpush1.bf16.msra.mxu1 %v5215_v34  ;;  %v5306_v33 = vld [vmem:[#allocation5 + $0x8c4] ss:$16 sps:$4 sm:$0xff]   ;;  %v5309_v34 = vld [vmem:[#allocation5 + $0x8cc] ss:$16 sps:$4 sm:$0xff]  }
 0x149   :  { %3467 = vmatprep.subr.bf16.mxu0 %v5216_v35  ;;  %3979 = vmatprep.subr.bf16.mxu1 %v5219_v36  ;;  %v5308_v35 = vld [vmem:[#allocation5 + $0x8c0] ss:$16 sps:$4 sm:$0xff]   ;;  %v5311_v36 = vld [vmem:[#allocation5 + $0x8c8] ss:$16 sps:$4 sm:$0xff]  }
 0x14c   :  { %3469 = vmatpush1.bf16.msra.mxu0 %v5218_v37  ;;  %3981 = vmatpush1.bf16.msra.mxu1 %v5221_v38  ;;  %v5312_v37 = vld [vmem:[#allocation5 + $0x8e4] ss:$16 sps:$4 sm:$0xff]   ;;  %v5315_v38 = vld [vmem:[#allocation5 + $0x8ec] ss:$16 sps:$4 sm:$0xff]  }
 0x14d   :  { %3471 = vmatprep.subr.bf16.mxu0 %v5222_v39  ;;  %3983 = vmatprep.subr.bf16.mxu1 %v5225_v40  ;;  %v5314_v39 = vld [vmem:[#allocation5 + $0x8e0] ss:$16 sps:$4 sm:$0xff]   ;;  %v5317_v40 = vld [vmem:[#allocation5 + $0x8e8] ss:$16 sps:$4 sm:$0xff]  }
 0x150   :  { %3473 = vmatpush1.bf16.msra.mxu0 %v5224_v41  ;;  %3985 = vmatpush1.bf16.msra.mxu1 %v5227_v42  ;;  %v5318_v41 = vld [vmem:[#allocation5 + $0x904] ss:$16 sps:$4 sm:$0xff]   ;;  %v5321_v42 = vld [vmem:[#allocation5 + $0x90c] ss:$16 sps:$4 sm:$0xff]  }
 0x151   :  { %3475 = vmatprep.subr.bf16.mxu0 %v5228_v43  ;;  %3987 = vmatprep.subr.bf16.mxu1 %v5231_v44  ;;  %v5320_v43 = vld [vmem:[#allocation5 + $0x900] ss:$16 sps:$4 sm:$0xff]   ;;  %v5323_v44 = vld [vmem:[#allocation5 + $0x908] ss:$16 sps:$4 sm:$0xff]  }
 0x154   :  { %3477 = vmatpush1.bf16.msra.mxu0 %v5230_v45  ;;  %3989 = vmatpush1.bf16.msra.mxu1 %v5233_v46  ;;  %v5324_v45 = vld [vmem:[#allocation5 + $0x924] ss:$16 sps:$4 sm:$0xff]   ;;  %v5327_v46 = vld [vmem:[#allocation5 + $0x92c] ss:$16 sps:$4 sm:$0xff]  }
 0x155   :  { %3479 = vmatprep.subr.bf16.mxu0 %v5234_v47  ;;  %3991 = vmatprep.subr.bf16.mxu1 %v5237_v48  ;;  %v5326_v47 = vld [vmem:[#allocation5 + $0x920] ss:$16 sps:$4 sm:$0xff]   ;;  %v5329_v48 = vld [vmem:[#allocation5 + $0x928] ss:$16 sps:$4 sm:$0xff]  }
 0x158   :  { %3481 = vmatpush1.bf16.msra.mxu0 %v5236_v49  ;;  %3993 = vmatpush1.bf16.msra.mxu1 %v5239_v50  ;;  %v5330_v49 = vld [vmem:[#allocation5 + $0x944] ss:$16 sps:$4 sm:$0xff]   ;;  %v5333_v50 = vld [vmem:[#allocation5 + $0x94c] ss:$16 sps:$4 sm:$0xff]  }
 0x159   :  { %3483 = vmatprep.subr.bf16.mxu0 %v5240_v51  ;;  %3995 = vmatprep.subr.bf16.mxu1 %v5243_v52  ;;  %v5332_v51 = vld [vmem:[#allocation5 + $0x940] ss:$16 sps:$4 sm:$0xff]   ;;  %v5335_v52 = vld [vmem:[#allocation5 + $0x948] ss:$16 sps:$4 sm:$0xff]  }
 0x15c   :  { %3485 = vmatpush1.bf16.msra.mxu0 %v5242_v53  ;;  %3997 = vmatpush1.bf16.msra.mxu1 %v5245_v54  ;;  %v5336_v53 = vld [vmem:[#allocation5 + $0x964] ss:$16 sps:$4 sm:$0xff]   ;;  %v5339_v54 = vld [vmem:[#allocation5 + $0x96c] ss:$16 sps:$4 sm:$0xff]  }
 0x15d   :  { %3487 = vmatprep.subr.bf16.mxu0 %v5246_v55  ;;  %3999 = vmatprep.subr.bf16.mxu1 %v5249_v56  ;;  %v5338_v55 = vld [vmem:[#allocation5 + $0x960] ss:$16 sps:$4 sm:$0xff]   ;;  %v5341_v56 = vld [vmem:[#allocation5 + $0x968] ss:$16 sps:$4 sm:$0xff]  }
 0x160   :  { %3489 = vmatpush1.bf16.msra.mxu0 %v5248_v57  ;;  %4001 = vmatpush1.bf16.msra.mxu1 %v5251_v58  ;;  %v5342_v57 = vld [vmem:[#allocation5 + $0x984] ss:$16 sps:$4 sm:$0xff]   ;;  %v5345_v58 = vld [vmem:[#allocation5 + $0x98c] ss:$16 sps:$4 sm:$0xff]  }
 0x161   :  { %3491 = vmatprep.subr.bf16.mxu0 %v5252_v59  ;;  %4003 = vmatprep.subr.bf16.mxu1 %v5255_v60  ;;  %v5344_v59 = vld [vmem:[#allocation5 + $0x980] ss:$16 sps:$4 sm:$0xff]   ;;  %v5347_v60 = vld [vmem:[#allocation5 + $0x988] ss:$16 sps:$4 sm:$0xff]  }
 0x164   :  { %3493 = vmatpush1.bf16.msra.mxu0 %v5254_v61  ;;  %4005 = vmatpush1.bf16.msra.mxu1 %v5257_v62  ;;  %v5348_v61 = vld [vmem:[#allocation5 + $0x9a4] ss:$16 sps:$4 sm:$0xff]   ;;  %v5351_v62 = vld [vmem:[#allocation5 + $0x9ac] ss:$16 sps:$4 sm:$0xff]  }
 0x165   :  { %3495 = vmatprep.subr.bf16.mxu0 %v5258_v63  ;;  %4007 = vmatprep.subr.bf16.mxu1 %v5261_v0  ;;  %v5350_v63 = vld [vmem:[#allocation5 + $0x9a0] ss:$16 sps:$4 sm:$0xff]   ;;  %v5353_v0 = vld [vmem:[#allocation5 + $0x9a8] ss:$16 sps:$4 sm:$0xff]  }
 0x168   :  { %3497 = vmatpush1.bf16.msra.mxu0 %v5260_v1  ;;  %4009 = vmatpush1.bf16.msra.mxu1 %v5263_v2  ;;  %v5354_v1 = vld [vmem:[#allocation5 + $0x9c4] ss:$16 sps:$4 sm:$0xff]   ;;  %v5357_v2 = vld [vmem:[#allocation5 + $0x9cc] ss:$16 sps:$4 sm:$0xff]  }
 0x169   :  { %3499 = vmatprep.subr.bf16.mxu0 %v5264_v3  ;;  %4011 = vmatprep.subr.bf16.mxu1 %v5267_v4  ;;  %v5356_v3 = vld [vmem:[#allocation5 + $0x9c0] ss:$16 sps:$4 sm:$0xff]   ;;  %v5359_v4 = vld [vmem:[#allocation5 + $0x9c8] ss:$16 sps:$4 sm:$0xff]  }
 0x16c   :  { %3501 = vmatpush1.bf16.msra.mxu0 %v5266_v5  ;;  %4013 = vmatpush1.bf16.msra.mxu1 %v5269_v6  ;;  %v5360_v5 = vld [vmem:[#allocation5 + $0x9e4] ss:$16 sps:$4 sm:$0xff]   ;;  %v5363_v6 = vld [vmem:[#allocation5 + $0x9ec] ss:$16 sps:$4 sm:$0xff]  }
 0x16d   :  { %3503 = vmatprep.subr.bf16.mxu0 %v5270_v7  ;;  %4015 = vmatprep.subr.bf16.mxu1 %v5273_v8  ;;  %v5362_v7 = vld [vmem:[#allocation5 + $0x9e0] ss:$16 sps:$4 sm:$0xff]   ;;  %v5365_v8 = vld [vmem:[#allocation5 + $0x9e8] ss:$16 sps:$4 sm:$0xff]  }
 0x16f   :  { %1928 = vmatmul.mubr.f32.vlgmr.msra.gmra.mrb[0].mxu0 %v104_v11  ;;  %2496 = vmatmul.mubr.f32.vlgmr.msra.gmra.mrb[0].mxu1 %v104_v11  ;;  %v5368_v11 = vld [vmem:[#allocation5 + $0xa00] ss:$16 sps:$4 sm:$0xff]  }
 0x170   :  { %3505 = vmatpush1.bf16.msra.mxu0 %v5272_v9  ;;  %4017 = vmatpush1.bf16.msra.mxu1 %v5275_v10  ;;  %v5366_v9 = vld [vmem:[#allocation5 + $0xa04] ss:$16 sps:$4 sm:$0xff]   ;;  %v5369_v10 = vld [vmem:[#allocation5 + $0xa0c] ss:$16 sps:$4 sm:$0xff]  }
 0x171   :  { %3507 = vmatprep.subr.bf16.mxu0 %v5276_v12  ;;  %4019 = vmatprep.subr.bf16.mxu1 %v5279_v13  ;;  %v5371_v12 = vld [vmem:[#allocation5 + $0xa08] ss:$16 sps:$4 sm:$0xff]   ;;  %v106_v13 = vld [vmem:[#allocation2 + $0x40] sm:$0xff] }
 0x172   :  { %1998 = vmatprep.mubr.f32.mxu0 %v107_v15  ;;  %2566 = vmatprep.mubr.f32.mxu1 %v107_v15  ;;  %v5375_v15 = vld [vmem:[#allocation5 + $0xa2c] ss:$16 sps:$4 sm:$0xff]  }
 0x174   :  { %3509 = vmatpush1.bf16.msra.mxu0 %v5278_v14  ;;  %4021 = vmatpush1.bf16.msra.mxu1 %v5281_v16  ;;  %v5372_v14 = vld [vmem:[#allocation5 + $0xa24] ss:$16 sps:$4 sm:$0xff]   ;;  %v5374_v16 = vld [vmem:[#allocation5 + $0xa20] ss:$16 sps:$4 sm:$0xff]  }
 0x175   :  { %3511 = vmatprep.subr.bf16.mxu0 %v5282_v17  ;;  %4023 = vmatprep.subr.bf16.mxu1 %v5285_v18  ;;  %v109_v17 = vld [vmem:[#allocation2 + $0x58] sm:$0xff] }
 0x176   :  { %v5377_v18 = vld [vmem:[#allocation5 + $0xa28] ss:$16 sps:$4 sm:$0xff]  }
 0x178   :  { %3513 = vmatpush1.bf16.msra.mxu0 %v5284_v19  ;;  %4025 = vmatpush1.bf16.msra.mxu1 %v5287_v20  ;;  %v5378_v19 = vld [vmem:[#allocation5 + $0xa44] ss:$16 sps:$4 sm:$0xff]   ;;  %v5381_v20 = vld [vmem:[#allocation5 + $0xa4c] ss:$16 sps:$4 sm:$0xff]  }
 0x179   :  { %3515 = vmatprep.subr.bf16.mxu0 %v5288_v21  ;;  %4027 = vmatprep.subr.bf16.mxu1 %v5291_v22  ;;  %v5380_v21 = vld [vmem:[#allocation5 + $0xa40] ss:$16 sps:$4 sm:$0xff]   ;;  %v5383_v22 = vld [vmem:[#allocation5 + $0xa48] ss:$16 sps:$4 sm:$0xff]  }
 0x17c   :  { %3517 = vmatpush1.bf16.msra.mxu0 %v5290_v23  ;;  %4029 = vmatpush1.bf16.msra.mxu1 %v5293_v24  ;;  %v5384_v23 = vld [vmem:[#allocation5 + $0xa64] ss:$16 sps:$4 sm:$0xff]   ;;  %v5387_v24 = vld [vmem:[#allocation5 + $0xa6c] ss:$16 sps:$4 sm:$0xff]  }
 0x17d   :  { %3519 = vmatprep.subr.bf16.mxu0 %v5294_v25  ;;  %4031 = vmatprep.subr.bf16.mxu1 %v5297_v26  ;;  %v5386_v25 = vld [vmem:[#allocation5 + $0xa60] ss:$16 sps:$4 sm:$0xff]   ;;  %v5389_v26 = vld [vmem:[#allocation5 + $0xa68] ss:$16 sps:$4 sm:$0xff]  }
 0x180   :  { %3521 = vmatpush1.bf16.msra.mxu0 %v5296_v27  ;;  %4033 = vmatpush1.bf16.msra.mxu1 %v5299_v28  ;;  %v5390_v27 = vld [vmem:[#allocation5 + $0xa84] ss:$16 sps:$4 sm:$0xff]   ;;  %v5393_v28 = vld [vmem:[#allocation5 + $0xa8c] ss:$16 sps:$4 sm:$0xff]  }
 0x181   :  { %3523 = vmatprep.subr.bf16.mxu0 %v5300_v29  ;;  %4035 = vmatprep.subr.bf16.mxu1 %v5303_v30  ;;  %v5392_v29 = vld [vmem:[#allocation5 + $0xa80] ss:$16 sps:$4 sm:$0xff]   ;;  %v5395_v30 = vld [vmem:[#allocation5 + $0xa88] ss:$16 sps:$4 sm:$0xff]  }
 0x184   :  { %3525 = vmatpush1.bf16.msra.mxu0 %v5302_v31  ;;  %4037 = vmatpush1.bf16.msra.mxu1 %v5305_v32  ;;  %v5396_v31 = vld [vmem:[#allocation5 + $0xaa4] ss:$16 sps:$4 sm:$0xff]   ;;  %v5399_v32 = vld [vmem:[#allocation5 + $0xaac] ss:$16 sps:$4 sm:$0xff]  }
 0x185   :  { %3527 = vmatprep.subr.bf16.mxu0 %v5306_v33  ;;  %4039 = vmatprep.subr.bf16.mxu1 %v5309_v34  ;;  %v5398_v33 = vld [vmem:[#allocation5 + $0xaa0] ss:$16 sps:$4 sm:$0xff]   ;;  %v5401_v34 = vld [vmem:[#allocation5 + $0xaa8] ss:$16 sps:$4 sm:$0xff]  }
 0x188   :  { %3529 = vmatpush1.bf16.msra.mxu0 %v5308_v35  ;;  %4041 = vmatpush1.bf16.msra.mxu1 %v5311_v36  ;;  %v5402_v35 = vld [vmem:[#allocation5 + $0xac4] ss:$16 sps:$4 sm:$0xff]   ;;  %v5405_v36 = vld [vmem:[#allocation5 + $0xacc] ss:$16 sps:$4 sm:$0xff]  }
 0x189   :  { %3531 = vmatprep.subr.bf16.mxu0 %v5312_v37  ;;  %4043 = vmatprep.subr.bf16.mxu1 %v5315_v38  ;;  %v5404_v37 = vld [vmem:[#allocation5 + $0xac0] ss:$16 sps:$4 sm:$0xff]   ;;  %v5407_v38 = vld [vmem:[#allocation5 + $0xac8] ss:$16 sps:$4 sm:$0xff]  }
 0x18c   :  { %3533 = vmatpush1.bf16.msra.mxu0 %v5314_v39  ;;  %4045 = vmatpush1.bf16.msra.mxu1 %v5317_v40  ;;  %v5408_v39 = vld [vmem:[#allocation5 + $0xae4] ss:$16 sps:$4 sm:$0xff]   ;;  %v5411_v40 = vld [vmem:[#allocation5 + $0xaec] ss:$16 sps:$4 sm:$0xff]  }
 0x18d   :  { %3535 = vmatprep.subr.bf16.mxu0 %v5318_v41  ;;  %4047 = vmatprep.subr.bf16.mxu1 %v5321_v42  ;;  %v5410_v41 = vld [vmem:[#allocation5 + $0xae0] ss:$16 sps:$4 sm:$0xff]   ;;  %v5413_v42 = vld [vmem:[#allocation5 + $0xae8] ss:$16 sps:$4 sm:$0xff]  }
 0x190   :  { %3537 = vmatpush1.bf16.msra.mxu0 %v5320_v43  ;;  %4049 = vmatpush1.bf16.msra.mxu1 %v5323_v44  ;;  %v5414_v43 = vld [vmem:[#allocation5 + $0xb04] ss:$16 sps:$4 sm:$0xff]   ;;  %v5417_v44 = vld [vmem:[#allocation5 + $0xb0c] ss:$16 sps:$4 sm:$0xff]  }
 0x191   :  { %3539 = vmatprep.subr.bf16.mxu0 %v5324_v45  ;;  %4051 = vmatprep.subr.bf16.mxu1 %v5327_v46  ;;  %v5416_v45 = vld [vmem:[#allocation5 + $0xb00] ss:$16 sps:$4 sm:$0xff]   ;;  %v5419_v46 = vld [vmem:[#allocation5 + $0xb08] ss:$16 sps:$4 sm:$0xff]  }
 0x194   :  { %3541 = vmatpush1.bf16.msra.mxu0 %v5326_v47  ;;  %4053 = vmatpush1.bf16.msra.mxu1 %v5329_v48  ;;  %v5420_v47 = vld [vmem:[#allocation5 + $0xb24] ss:$16 sps:$4 sm:$0xff]   ;;  %v5423_v48 = vld [vmem:[#allocation5 + $0xb2c] ss:$16 sps:$4 sm:$0xff]  }
 0x195   :  { %3543 = vmatprep.subr.bf16.mxu0 %v5330_v49  ;;  %4055 = vmatprep.subr.bf16.mxu1 %v5333_v50  ;;  %v5422_v49 = vld [vmem:[#allocation5 + $0xb20] ss:$16 sps:$4 sm:$0xff]   ;;  %v5425_v50 = vld [vmem:[#allocation5 + $0xb28] ss:$16 sps:$4 sm:$0xff]  }
 0x198   :  { %3545 = vmatpush1.bf16.msra.mxu0 %v5332_v51  ;;  %4057 = vmatpush1.bf16.msra.mxu1 %v5335_v52  ;;  %v5426_v51 = vld [vmem:[#allocation5 + $0xb44] ss:$16 sps:$4 sm:$0xff]   ;;  %v5429_v52 = vld [vmem:[#allocation5 + $0xb4c] ss:$16 sps:$4 sm:$0xff]  }
 0x199   :  { %3547 = vmatprep.subr.bf16.mxu0 %v5336_v53  ;;  %4059 = vmatprep.subr.bf16.mxu1 %v5339_v54  ;;  %v5428_v53 = vld [vmem:[#allocation5 + $0xb40] ss:$16 sps:$4 sm:$0xff]   ;;  %v5431_v54 = vld [vmem:[#allocation5 + $0xb48] ss:$16 sps:$4 sm:$0xff]  }
 0x19c   :  { %3549 = vmatpush1.bf16.msra.mxu0 %v5338_v55  ;;  %4061 = vmatpush1.bf16.msra.mxu1 %v5341_v56  ;;  %v5432_v55 = vld [vmem:[#allocation5 + $0xb64] ss:$16 sps:$4 sm:$0xff]   ;;  %v5435_v56 = vld [vmem:[#allocation5 + $0xb6c] ss:$16 sps:$4 sm:$0xff]  }
 0x19d   :  { %3551 = vmatprep.subr.bf16.mxu0 %v5342_v57  ;;  %4063 = vmatprep.subr.bf16.mxu1 %v5345_v58  ;;  %v5434_v57 = vld [vmem:[#allocation5 + $0xb60] ss:$16 sps:$4 sm:$0xff]   ;;  %v5437_v58 = vld [vmem:[#allocation5 + $0xb68] ss:$16 sps:$4 sm:$0xff]  }
 0x1a0   :  { %3553 = vmatpush1.bf16.msra.mxu0 %v5344_v59  ;;  %4065 = vmatpush1.bf16.msra.mxu1 %v5347_v60  ;;  %v5438_v59 = vld [vmem:[#allocation5 + $0xb84] ss:$16 sps:$4 sm:$0xff]   ;;  %v5441_v60 = vld [vmem:[#allocation5 + $0xb8c] ss:$16 sps:$4 sm:$0xff]  }
 0x1a1   :  { %3555 = vmatprep.subr.bf16.mxu0 %v5348_v61  ;;  %4067 = vmatprep.subr.bf16.mxu1 %v5351_v62  ;;  %v5440_v61 = vld [vmem:[#allocation5 + $0xb80] ss:$16 sps:$4 sm:$0xff]   ;;  %v5443_v62 = vld [vmem:[#allocation5 + $0xb88] ss:$16 sps:$4 sm:$0xff]  }
 0x1a4   :  { %3557 = vmatpush1.bf16.msra.mxu0 %v5350_v63  ;;  %4069 = vmatpush1.bf16.msra.mxu1 %v5353_v0  ;;  %v5444_v63 = vld [vmem:[#allocation5 + $0xba4] ss:$16 sps:$4 sm:$0xff]   ;;  %v5447_v0 = vld [vmem:[#allocation5 + $0xbac] ss:$16 sps:$4 sm:$0xff]  }
 0x1a5   :  { %3559 = vmatprep.subr.bf16.mxu0 %v5354_v1  ;;  %4071 = vmatprep.subr.bf16.mxu1 %v5357_v2  ;;  %v5446_v1 = vld [vmem:[#allocation5 + $0xba0] ss:$16 sps:$4 sm:$0xff]   ;;  %v5449_v2 = vld [vmem:[#allocation5 + $0xba8] ss:$16 sps:$4 sm:$0xff]  }
 0x1a8   :  { %3561 = vmatpush1.bf16.msra.mxu0 %v5356_v3  ;;  %4073 = vmatpush1.bf16.msra.mxu1 %v5359_v4  ;;  %v5450_v3 = vld [vmem:[#allocation5 + $0xbc4] ss:$16 sps:$4 sm:$0xff]   ;;  %v5453_v4 = vld [vmem:[#allocation5 + $0xbcc] ss:$16 sps:$4 sm:$0xff]  }
 0x1a9   :  { %3563 = vmatprep.subr.bf16.mxu0 %v5360_v5  ;;  %4075 = vmatprep.subr.bf16.mxu1 %v5363_v6  ;;  %v5452_v5 = vld [vmem:[#allocation5 + $0xbc0] ss:$16 sps:$4 sm:$0xff]   ;;  %v5455_v6 = vld [vmem:[#allocation5 + $0xbc8] ss:$16 sps:$4 sm:$0xff]  }
 0x1ac   :  { %3565 = vmatpush1.bf16.msra.mxu0 %v5362_v7  ;;  %4077 = vmatpush1.bf16.msra.mxu1 %v5365_v8  ;;  %v5456_v7 = vld [vmem:[#allocation5 + $0xbe4] ss:$16 sps:$4 sm:$0xff]   ;;  %v5459_v8 = vld [vmem:[#allocation5 + $0xbec] ss:$16 sps:$4 sm:$0xff]  }
 0x1ad   :  { %3567 = vmatprep.subr.bf16.mxu0 %v5366_v9  ;;  %4079 = vmatprep.subr.bf16.mxu1 %v5369_v10  ;;  %v5458_v9 = vld [vmem:[#allocation5 + $0xbe0] ss:$16 sps:$4 sm:$0xff]   ;;  %v5461_v10 = vld [vmem:[#allocation5 + $0xbe8] ss:$16 sps:$4 sm:$0xff]  }
 0x1af   :  { %1999 = vmatmul.mubr.f32.vlgmr.msra.gmra.mrb[0].mxu0 %v106_v13  ;;  %2567 = vmatmul.mubr.f32.vlgmr.msra.gmra.mrb[0].mxu1 %v106_v13  ;;  %v5464_v13 = vld [vmem:[#allocation5 + $0xc00] ss:$16 sps:$4 sm:$0xff]  }
 0x1b0   :  { %3569 = vmatpush1.bf16.msra.mxu0 %v5368_v11  ;;  %4081 = vmatpush1.bf16.msra.mxu1 %v5371_v12  ;;  %v5462_v11 = vld [vmem:[#allocation5 + $0xc04] ss:$16 sps:$4 sm:$0xff]   ;;  %v5465_v12 = vld [vmem:[#allocation5 + $0xc0c] ss:$16 sps:$4 sm:$0xff]  }
 0x1b1   :  { %3571 = vmatprep.subr.bf16.mxu0 %v5372_v14  ;;  %4083 = vmatprep.subr.bf16.mxu1 %v5375_v15  ;;  %v5467_v14 = vld [vmem:[#allocation5 + $0xc08] ss:$16 sps:$4 sm:$0xff]   ;;  %v108_v15 = vld [vmem:[#allocation2 + $0x50] sm:$0xff] }
 0x1b2   :  { %2069 = vmatprep.mubr.f32.mxu0 %v109_v17  ;;  %2637 = vmatprep.mubr.f32.mxu1 %v109_v17  ;;  %v5471_v17 = vld [vmem:[#allocation5 + $0xc2c] ss:$16 sps:$4 sm:$0xff]  }
 0x1b4   :  { %3573 = vmatpush1.bf16.msra.mxu0 %v5374_v16  ;;  %4085 = vmatpush1.bf16.msra.mxu1 %v5377_v18  ;;  %v5468_v16 = vld [vmem:[#allocation5 + $0xc24] ss:$16 sps:$4 sm:$0xff]   ;;  %v111_v18 = vld [vmem:[#allocation2 + $0x68] sm:$0xff] }
 0x1b5   :  { %3575 = vmatprep.subr.bf16.mxu0 %v5378_v19  ;;  %4087 = vmatprep.subr.bf16.mxu1 %v5381_v20  ;;  %v5470_v19 = vld [vmem:[#allocation5 + $0xc20] ss:$16 sps:$4 sm:$0xff]   ;;  %v5473_v20 = vld [vmem:[#allocation5 + $0xc28] ss:$16 sps:$4 sm:$0xff]  }
 0x1b8   :  { %3577 = vmatpush1.bf16.msra.mxu0 %v5380_v21  ;;  %4089 = vmatpush1.bf16.msra.mxu1 %v5383_v22  ;;  %v5474_v21 = vld [vmem:[#allocation5 + $0xc44] ss:$16 sps:$4 sm:$0xff]   ;;  %v5477_v22 = vld [vmem:[#allocation5 + $0xc4c] ss:$16 sps:$4 sm:$0xff]  }
 0x1b9   :  { %3579 = vmatprep.subr.bf16.mxu0 %v5384_v23  ;;  %4091 = vmatprep.subr.bf16.mxu1 %v5387_v24  ;;  %v5476_v23 = vld [vmem:[#allocation5 + $0xc40] ss:$16 sps:$4 sm:$0xff]   ;;  %v5479_v24 = vld [vmem:[#allocation5 + $0xc48] ss:$16 sps:$4 sm:$0xff]  }
 0x1bc   :  { %3581 = vmatpush1.bf16.msra.mxu0 %v5386_v25  ;;  %4093 = vmatpush1.bf16.msra.mxu1 %v5389_v26  ;;  %v5480_v25 = vld [vmem:[#allocation5 + $0xc64] ss:$16 sps:$4 sm:$0xff]   ;;  %v5483_v26 = vld [vmem:[#allocation5 + $0xc6c] ss:$16 sps:$4 sm:$0xff]  }
 0x1bd   :  { %3583 = vmatprep.subr.bf16.mxu0 %v5390_v27  ;;  %4095 = vmatprep.subr.bf16.mxu1 %v5393_v28  ;;  %v5482_v27 = vld [vmem:[#allocation5 + $0xc60] ss:$16 sps:$4 sm:$0xff]   ;;  %v5485_v28 = vld [vmem:[#allocation5 + $0xc68] ss:$16 sps:$4 sm:$0xff]  }
 0x1c0   :  { %3585 = vmatpush1.bf16.msra.mxu0 %v5392_v29  ;;  %4097 = vmatpush1.bf16.msra.mxu1 %v5395_v30  ;;  %v5486_v29 = vld [vmem:[#allocation5 + $0xc84] ss:$16 sps:$4 sm:$0xff]   ;;  %v5489_v30 = vld [vmem:[#allocation5 + $0xc8c] ss:$16 sps:$4 sm:$0xff]  }
 0x1c1   :  { %3587 = vmatprep.subr.bf16.mxu0 %v5396_v31  ;;  %4099 = vmatprep.subr.bf16.mxu1 %v5399_v32  ;;  %v5488_v31 = vld [vmem:[#allocation5 + $0xc80] ss:$16 sps:$4 sm:$0xff]   ;;  %v5491_v32 = vld [vmem:[#allocation5 + $0xc88] ss:$16 sps:$4 sm:$0xff]  }
 0x1c4   :  { %3589 = vmatpush1.bf16.msra.mxu0 %v5398_v33  ;;  %4101 = vmatpush1.bf16.msra.mxu1 %v5401_v34  ;;  %v5492_v33 = vld [vmem:[#allocation5 + $0xca4] ss:$16 sps:$4 sm:$0xff]   ;;  %v5495_v34 = vld [vmem:[#allocation5 + $0xcac] ss:$16 sps:$4 sm:$0xff]  }
 0x1c5   :  { %3591 = vmatprep.subr.bf16.mxu0 %v5402_v35  ;;  %4103 = vmatprep.subr.bf16.mxu1 %v5405_v36  ;;  %v5494_v35 = vld [vmem:[#allocation5 + $0xca0] ss:$16 sps:$4 sm:$0xff]   ;;  %v5497_v36 = vld [vmem:[#allocation5 + $0xca8] ss:$16 sps:$4 sm:$0xff]  }
 0x1c8   :  { %3593 = vmatpush1.bf16.msra.mxu0 %v5404_v37  ;;  %4105 = vmatpush1.bf16.msra.mxu1 %v5407_v38  ;;  %v5498_v37 = vld [vmem:[#allocation5 + $0xcc4] ss:$16 sps:$4 sm:$0xff]   ;;  %v5501_v38 = vld [vmem:[#allocation5 + $0xccc] ss:$16 sps:$4 sm:$0xff]  }
 0x1c9   :  { %3595 = vmatprep.subr.bf16.mxu0 %v5408_v39  ;;  %4107 = vmatprep.subr.bf16.mxu1 %v5411_v40  ;;  %v5500_v39 = vld [vmem:[#allocation5 + $0xcc0] ss:$16 sps:$4 sm:$0xff]   ;;  %v5503_v40 = vld [vmem:[#allocation5 + $0xcc8] ss:$16 sps:$4 sm:$0xff]  }
 0x1cc   :  { %3597 = vmatpush1.bf16.msra.mxu0 %v5410_v41  ;;  %4109 = vmatpush1.bf16.msra.mxu1 %v5413_v42  ;;  %v5504_v41 = vld [vmem:[#allocation5 + $0xce4] ss:$16 sps:$4 sm:$0xff]   ;;  %v5507_v42 = vld [vmem:[#allocation5 + $0xcec] ss:$16 sps:$4 sm:$0xff]  }
 0x1cd   :  { %3599 = vmatprep.subr.bf16.mxu0 %v5414_v43  ;;  %4111 = vmatprep.subr.bf16.mxu1 %v5417_v44  ;;  %v5506_v43 = vld [vmem:[#allocation5 + $0xce0] ss:$16 sps:$4 sm:$0xff]   ;;  %v5509_v44 = vld [vmem:[#allocation5 + $0xce8] ss:$16 sps:$4 sm:$0xff]  }
 0x1d0   :  { %3601 = vmatpush1.bf16.msra.mxu0 %v5416_v45  ;;  %4113 = vmatpush1.bf16.msra.mxu1 %v5419_v46  ;;  %v5510_v45 = vld [vmem:[#allocation5 + $0xd04] ss:$16 sps:$4 sm:$0xff]   ;;  %v5513_v46 = vld [vmem:[#allocation5 + $0xd0c] ss:$16 sps:$4 sm:$0xff]  }
 0x1d1   :  { %3603 = vmatprep.subr.bf16.mxu0 %v5420_v47  ;;  %4115 = vmatprep.subr.bf16.mxu1 %v5423_v48  ;;  %v5512_v47 = vld [vmem:[#allocation5 + $0xd00] ss:$16 sps:$4 sm:$0xff]   ;;  %v5515_v48 = vld [vmem:[#allocation5 + $0xd08] ss:$16 sps:$4 sm:$0xff]  }
 0x1d4   :  { %3605 = vmatpush1.bf16.msra.mxu0 %v5422_v49  ;;  %4117 = vmatpush1.bf16.msra.mxu1 %v5425_v50  ;;  %v5516_v49 = vld [vmem:[#allocation5 + $0xd24] ss:$16 sps:$4 sm:$0xff]   ;;  %v5519_v50 = vld [vmem:[#allocation5 + $0xd2c] ss:$16 sps:$4 sm:$0xff]  }
 0x1d5   :  { %3607 = vmatprep.subr.bf16.mxu0 %v5426_v51  ;;  %4119 = vmatprep.subr.bf16.mxu1 %v5429_v52  ;;  %v5518_v51 = vld [vmem:[#allocation5 + $0xd20] ss:$16 sps:$4 sm:$0xff]   ;;  %v5521_v52 = vld [vmem:[#allocation5 + $0xd28] ss:$16 sps:$4 sm:$0xff]  }
 0x1d8   :  { %3609 = vmatpush1.bf16.msra.mxu0 %v5428_v53  ;;  %4121 = vmatpush1.bf16.msra.mxu1 %v5431_v54  ;;  %v5522_v53 = vld [vmem:[#allocation5 + $0xd44] ss:$16 sps:$4 sm:$0xff]   ;;  %v5525_v54 = vld [vmem:[#allocation5 + $0xd4c] ss:$16 sps:$4 sm:$0xff]  }
 0x1d9   :  { %3611 = vmatprep.subr.bf16.mxu0 %v5432_v55  ;;  %4123 = vmatprep.subr.bf16.mxu1 %v5435_v56  ;;  %v5524_v55 = vld [vmem:[#allocation5 + $0xd40] ss:$16 sps:$4 sm:$0xff]   ;;  %v5527_v56 = vld [vmem:[#allocation5 + $0xd48] ss:$16 sps:$4 sm:$0xff]  }
 0x1dc   :  { %3613 = vmatpush1.bf16.msra.mxu0 %v5434_v57  ;;  %4125 = vmatpush1.bf16.msra.mxu1 %v5437_v58  ;;  %v5528_v57 = vld [vmem:[#allocation5 + $0xd64] ss:$16 sps:$4 sm:$0xff]   ;;  %v5531_v58 = vld [vmem:[#allocation5 + $0xd6c] ss:$16 sps:$4 sm:$0xff]  }
 0x1dd   :  { %3615 = vmatprep.subr.bf16.mxu0 %v5438_v59  ;;  %4127 = vmatprep.subr.bf16.mxu1 %v5441_v60  ;;  %v5530_v59 = vld [vmem:[#allocation5 + $0xd60] ss:$16 sps:$4 sm:$0xff]   ;;  %v5533_v60 = vld [vmem:[#allocation5 + $0xd68] ss:$16 sps:$4 sm:$0xff]  }
 0x1e0   :  { %3617 = vmatpush1.bf16.msra.mxu0 %v5440_v61  ;;  %4129 = vmatpush1.bf16.msra.mxu1 %v5443_v62  ;;  %v5534_v61 = vld [vmem:[#allocation5 + $0xd84] ss:$16 sps:$4 sm:$0xff]   ;;  %v5537_v62 = vld [vmem:[#allocation5 + $0xd8c] ss:$16 sps:$4 sm:$0xff]  }
 0x1e1   :  { %3619 = vmatprep.subr.bf16.mxu0 %v5444_v63  ;;  %4131 = vmatprep.subr.bf16.mxu1 %v5447_v0  ;;  %v5536_v63 = vld [vmem:[#allocation5 + $0xd80] ss:$16 sps:$4 sm:$0xff]   ;;  %v5539_v0 = vld [vmem:[#allocation5 + $0xd88] ss:$16 sps:$4 sm:$0xff]  }
 0x1e4   :  { %3621 = vmatpush1.bf16.msra.mxu0 %v5446_v1  ;;  %4133 = vmatpush1.bf16.msra.mxu1 %v5449_v2  ;;  %v5540_v1 = vld [vmem:[#allocation5 + $0xda4] ss:$16 sps:$4 sm:$0xff]   ;;  %v5543_v2 = vld [vmem:[#allocation5 + $0xdac] ss:$16 sps:$4 sm:$0xff]  }
 0x1e5   :  { %3623 = vmatprep.subr.bf16.mxu0 %v5450_v3  ;;  %4135 = vmatprep.subr.bf16.mxu1 %v5453_v4  ;;  %v5542_v3 = vld [vmem:[#allocation5 + $0xda0] ss:$16 sps:$4 sm:$0xff]   ;;  %v5545_v4 = vld [vmem:[#allocation5 + $0xda8] ss:$16 sps:$4 sm:$0xff]  }
 0x1e8   :  { %3625 = vmatpush1.bf16.msra.mxu0 %v5452_v5  ;;  %4137 = vmatpush1.bf16.msra.mxu1 %v5455_v6  ;;  %v5546_v5 = vld [vmem:[#allocation5 + $0xdc4] ss:$16 sps:$4 sm:$0xff]   ;;  %v5549_v6 = vld [vmem:[#allocation5 + $0xdcc] ss:$16 sps:$4 sm:$0xff]  }
 0x1e9   :  { %3627 = vmatprep.subr.bf16.mxu0 %v5456_v7  ;;  %4139 = vmatprep.subr.bf16.mxu1 %v5459_v8  ;;  %v5548_v7 = vld [vmem:[#allocation5 + $0xdc0] ss:$16 sps:$4 sm:$0xff]   ;;  %v5551_v8 = vld [vmem:[#allocation5 + $0xdc8] ss:$16 sps:$4 sm:$0xff]  }
 0x1ec   :  { %3629 = vmatpush1.bf16.msra.mxu0 %v5458_v9  ;;  %4141 = vmatpush1.bf16.msra.mxu1 %v5461_v10  ;;  %v5552_v9 = vld [vmem:[#allocation5 + $0xde4] ss:$16 sps:$4 sm:$0xff]   ;;  %v5555_v10 = vld [vmem:[#allocation5 + $0xdec] ss:$16 sps:$4 sm:$0xff]  }
 0x1ed   :  { %3631 = vmatprep.subr.bf16.mxu0 %v5462_v11  ;;  %4143 = vmatprep.subr.bf16.mxu1 %v5465_v12  ;;  %v5554_v11 = vld [vmem:[#allocation5 + $0xde0] ss:$16 sps:$4 sm:$0xff]   ;;  %v5557_v12 = vld [vmem:[#allocation5 + $0xde8] ss:$16 sps:$4 sm:$0xff]  }
 0x1ef   :  { %2070 = vmatmul.mubr.f32.vlgmr.msra.gmra.mrb[0].mxu0 %v108_v15  ;;  %2638 = vmatmul.mubr.f32.vlgmr.msra.gmra.mrb[0].mxu1 %v108_v15  ;;  %v5560_v15 = vld [vmem:[#allocation5 + $0xe00] ss:$16 sps:$4 sm:$0xff]  }
 0x1f0   :  { %3633 = vmatpush1.bf16.msra.mxu0 %v5464_v13  ;;  %4145 = vmatpush1.bf16.msra.mxu1 %v5467_v14  ;;  %v5558_v13 = vld [vmem:[#allocation5 + $0xe04] ss:$16 sps:$4 sm:$0xff]   ;;  %v5561_v14 = vld [vmem:[#allocation5 + $0xe0c] ss:$16 sps:$4 sm:$0xff]  }
 0x1f1   :  { %3635 = vmatprep.subr.bf16.mxu0 %v5468_v16  ;;  %4147 = vmatprep.subr.bf16.mxu1 %v5471_v17  ;;  %v5563_v16 = vld [vmem:[#allocation5 + $0xe08] ss:$16 sps:$4 sm:$0xff]   ;;  %v110_v17 = vld [vmem:[#allocation2 + $0x60] sm:$0xff] }
 0x1f2   :  { %2140 = vmatprep.mubr.f32.mxu0 %v111_v18  ;;  %2708 = vmatprep.mubr.f32.mxu1 %v111_v18  ;;  %v5564_v18 = vld [vmem:[#allocation5 + $0xe24] ss:$16 sps:$4 sm:$0xff]  }
 0x1f4   :  { %3637 = vmatpush1.bf16.msra.mxu0 %v5470_v19  ;;  %4149 = vmatpush1.bf16.msra.mxu1 %v5473_v20  ;;  %v5567_v19 = vld [vmem:[#allocation5 + $0xe2c] ss:$16 sps:$4 sm:$0xff]  }
 0x1f5   :  { %3639 = vmatprep.subr.bf16.mxu0 %v5474_v21  ;;  %4151 = vmatprep.subr.bf16.mxu1 %v5477_v22  ;;  %v113_v20 = vld [vmem:[#allocation2 + $0x78] sm:$0xff]  ;;  %v5566_v21 = vld [vmem:[#allocation5 + $0xe20] ss:$16 sps:$4 sm:$0xff]  }
 0x1f6   :  { %v5569_v22 = vld [vmem:[#allocation5 + $0xe28] ss:$16 sps:$4 sm:$0xff]  }
 0x1f8   :  { %3641 = vmatpush1.bf16.msra.mxu0 %v5476_v23  ;;  %4153 = vmatpush1.bf16.msra.mxu1 %v5479_v24  ;;  %v5570_v23 = vld [vmem:[#allocation5 + $0xe44] ss:$16 sps:$4 sm:$0xff]   ;;  %v5573_v24 = vld [vmem:[#allocation5 + $0xe4c] ss:$16 sps:$4 sm:$0xff]  }
 0x1f9   :  { %3643 = vmatprep.subr.bf16.mxu0 %v5480_v25  ;;  %4155 = vmatprep.subr.bf16.mxu1 %v5483_v26  ;;  %v5572_v25 = vld [vmem:[#allocation5 + $0xe40] ss:$16 sps:$4 sm:$0xff]   ;;  %v5575_v26 = vld [vmem:[#allocation5 + $0xe48] ss:$16 sps:$4 sm:$0xff]  }
 0x1fc   :  { %3645 = vmatpush1.bf16.msra.mxu0 %v5482_v27  ;;  %4157 = vmatpush1.bf16.msra.mxu1 %v5485_v28  ;;  %v5576_v27 = vld [vmem:[#allocation5 + $0xe64] ss:$16 sps:$4 sm:$0xff]   ;;  %v5579_v28 = vld [vmem:[#allocation5 + $0xe6c] ss:$16 sps:$4 sm:$0xff]  }
 0x1fd   :  { %3647 = vmatprep.subr.bf16.mxu0 %v5486_v29  ;;  %4159 = vmatprep.subr.bf16.mxu1 %v5489_v30  ;;  %v5578_v29 = vld [vmem:[#allocation5 + $0xe60] ss:$16 sps:$4 sm:$0xff]   ;;  %v5581_v30 = vld [vmem:[#allocation5 + $0xe68] ss:$16 sps:$4 sm:$0xff]  }
 0x200   :  { %3649 = vmatpush1.bf16.msra.mxu0 %v5488_v31  ;;  %4161 = vmatpush1.bf16.msra.mxu1 %v5491_v32  ;;  %v5582_v31 = vld [vmem:[#allocation5 + $0xe84] ss:$16 sps:$4 sm:$0xff]   ;;  %v5585_v32 = vld [vmem:[#allocation5 + $0xe8c] ss:$16 sps:$4 sm:$0xff]  }
 0x201   :  { %3651 = vmatprep.subr.bf16.mxu0 %v5492_v33  ;;  %4163 = vmatprep.subr.bf16.mxu1 %v5495_v34  ;;  %v5584_v33 = vld [vmem:[#allocation5 + $0xe80] ss:$16 sps:$4 sm:$0xff]   ;;  %v5587_v34 = vld [vmem:[#allocation5 + $0xe88] ss:$16 sps:$4 sm:$0xff]  }
 0x204   :  { %3653 = vmatpush1.bf16.msra.mxu0 %v5494_v35  ;;  %4165 = vmatpush1.bf16.msra.mxu1 %v5497_v36  ;;  %v5588_v35 = vld [vmem:[#allocation5 + $0xea4] ss:$16 sps:$4 sm:$0xff]   ;;  %v5591_v36 = vld [vmem:[#allocation5 + $0xeac] ss:$16 sps:$4 sm:$0xff]  }
 0x205   :  { %3655 = vmatprep.subr.bf16.mxu0 %v5498_v37  ;;  %4167 = vmatprep.subr.bf16.mxu1 %v5501_v38  ;;  %v5590_v37 = vld [vmem:[#allocation5 + $0xea0] ss:$16 sps:$4 sm:$0xff]   ;;  %v5593_v38 = vld [vmem:[#allocation5 + $0xea8] ss:$16 sps:$4 sm:$0xff]  }
 0x208   :  { %3657 = vmatpush1.bf16.msra.mxu0 %v5500_v39  ;;  %4169 = vmatpush1.bf16.msra.mxu1 %v5503_v40  ;;  %v5594_v39 = vld [vmem:[#allocation5 + $0xec4] ss:$16 sps:$4 sm:$0xff]   ;;  %v5597_v40 = vld [vmem:[#allocation5 + $0xecc] ss:$16 sps:$4 sm:$0xff]  }
 0x209   :  { %3659 = vmatprep.subr.bf16.mxu0 %v5504_v41  ;;  %4171 = vmatprep.subr.bf16.mxu1 %v5507_v42  ;;  %v5596_v41 = vld [vmem:[#allocation5 + $0xec0] ss:$16 sps:$4 sm:$0xff]   ;;  %v5599_v42 = vld [vmem:[#allocation5 + $0xec8] ss:$16 sps:$4 sm:$0xff]  }
 0x20c   :  { %3661 = vmatpush1.bf16.msra.mxu0 %v5506_v43  ;;  %4173 = vmatpush1.bf16.msra.mxu1 %v5509_v44  ;;  %v5600_v43 = vld [vmem:[#allocation5 + $0xee4] ss:$16 sps:$4 sm:$0xff]   ;;  %v5603_v44 = vld [vmem:[#allocation5 + $0xeec] ss:$16 sps:$4 sm:$0xff]  }
 0x20d   :  { %3663 = vmatprep.subr.bf16.mxu0 %v5510_v45  ;;  %4175 = vmatprep.subr.bf16.mxu1 %v5513_v46  ;;  %v5602_v45 = vld [vmem:[#allocation5 + $0xee0] ss:$16 sps:$4 sm:$0xff]   ;;  %v5605_v46 = vld [vmem:[#allocation5 + $0xee8] ss:$16 sps:$4 sm:$0xff]  }
 0x210   :  { %3665 = vmatpush1.bf16.msra.mxu0 %v5512_v47  ;;  %4177 = vmatpush1.bf16.msra.mxu1 %v5515_v48  ;;  %v5606_v47 = vld [vmem:[#allocation5 + $0xf04] ss:$16 sps:$4 sm:$0xff]   ;;  %v5609_v48 = vld [vmem:[#allocation5 + $0xf0c] ss:$16 sps:$4 sm:$0xff]  }
 0x211   :  { %3667 = vmatprep.subr.bf16.mxu0 %v5516_v49  ;;  %4179 = vmatprep.subr.bf16.mxu1 %v5519_v50  ;;  %v5608_v49 = vld [vmem:[#allocation5 + $0xf00] ss:$16 sps:$4 sm:$0xff]   ;;  %v5611_v50 = vld [vmem:[#allocation5 + $0xf08] ss:$16 sps:$4 sm:$0xff]  }
 0x214   :  { %3669 = vmatpush1.bf16.msra.mxu0 %v5518_v51  ;;  %4181 = vmatpush1.bf16.msra.mxu1 %v5521_v52  ;;  %v5612_v51 = vld [vmem:[#allocation5 + $0xf24] ss:$16 sps:$4 sm:$0xff]   ;;  %v5615_v52 = vld [vmem:[#allocation5 + $0xf2c] ss:$16 sps:$4 sm:$0xff]  }
 0x215   :  { %3671 = vmatprep.subr.bf16.mxu0 %v5522_v53  ;;  %4183 = vmatprep.subr.bf16.mxu1 %v5525_v54  ;;  %v5614_v53 = vld [vmem:[#allocation5 + $0xf20] ss:$16 sps:$4 sm:$0xff]   ;;  %v5617_v54 = vld [vmem:[#allocation5 + $0xf28] ss:$16 sps:$4 sm:$0xff]  }
 0x218   :  { %3673 = vmatpush1.bf16.msra.mxu0 %v5524_v55  ;;  %4185 = vmatpush1.bf16.msra.mxu1 %v5527_v56  ;;  %v5618_v55 = vld [vmem:[#allocation5 + $0xf44] ss:$16 sps:$4 sm:$0xff]   ;;  %v5621_v56 = vld [vmem:[#allocation5 + $0xf4c] ss:$16 sps:$4 sm:$0xff]  }
 0x219   :  { %3675 = vmatprep.subr.bf16.mxu0 %v5528_v57  ;;  %4187 = vmatprep.subr.bf16.mxu1 %v5531_v58  ;;  %v5620_v57 = vld [vmem:[#allocation5 + $0xf40] ss:$16 sps:$4 sm:$0xff]   ;;  %v5623_v58 = vld [vmem:[#allocation5 + $0xf48] ss:$16 sps:$4 sm:$0xff]  }
 0x21c   :  { %3677 = vmatpush1.bf16.msra.mxu0 %v5530_v59  ;;  %4189 = vmatpush1.bf16.msra.mxu1 %v5533_v60  ;;  %v5624_v59 = vld [vmem:[#allocation5 + $0xf64] ss:$16 sps:$4 sm:$0xff]   ;;  %v5627_v60 = vld [vmem:[#allocation5 + $0xf6c] ss:$16 sps:$4 sm:$0xff]  }
 0x21d   :  { %3679 = vmatprep.subr.bf16.mxu0 %v5534_v61  ;;  %4191 = vmatprep.subr.bf16.mxu1 %v5537_v62  ;;  %v5626_v61 = vld [vmem:[#allocation5 + $0xf60] ss:$16 sps:$4 sm:$0xff]   ;;  %v5629_v62 = vld [vmem:[#allocation5 + $0xf68] ss:$16 sps:$4 sm:$0xff]  }
 0x220   :  { %3681 = vmatpush1.bf16.msra.mxu0 %v5536_v63  ;;  %4193 = vmatpush1.bf16.msra.mxu1 %v5539_v0  ;;  %v5630_v63 = vld [vmem:[#allocation5 + $0xf84] ss:$16 sps:$4 sm:$0xff]   ;;  %v5633_v0 = vld [vmem:[#allocation5 + $0xf8c] ss:$16 sps:$4 sm:$0xff]  }
 0x221   :  { %3683 = vmatprep.subr.bf16.mxu0 %v5540_v1  ;;  %4195 = vmatprep.subr.bf16.mxu1 %v5543_v2  ;;  %v5632_v1 = vld [vmem:[#allocation5 + $0xf80] ss:$16 sps:$4 sm:$0xff]   ;;  %v5635_v2 = vld [vmem:[#allocation5 + $0xf88] ss:$16 sps:$4 sm:$0xff]  }
 0x224   :  { %3685 = vmatpush1.bf16.msra.mxu0 %v5542_v3  ;;  %4197 = vmatpush1.bf16.msra.mxu1 %v5545_v4  ;;  %v5636_v3 = vld [vmem:[#allocation5 + $0xfa4] ss:$16 sps:$4 sm:$0xff]   ;;  %v5639_v4 = vld [vmem:[#allocation5 + $0xfac] ss:$16 sps:$4 sm:$0xff]  }
 0x225   :  { %3687 = vmatprep.subr.bf16.mxu0 %v5546_v5  ;;  %4199 = vmatprep.subr.bf16.mxu1 %v5549_v6  ;;  %v5638_v5 = vld [vmem:[#allocation5 + $0xfa0] ss:$16 sps:$4 sm:$0xff]   ;;  %v5641_v6 = vld [vmem:[#allocation5 + $0xfa8] ss:$16 sps:$4 sm:$0xff]  }
 0x228   :  { %3689 = vmatpush1.bf16.msra.mxu0 %v5548_v7  ;;  %4201 = vmatpush1.bf16.msra.mxu1 %v5551_v8  ;;  %v5642_v7 = vld [vmem:[#allocation5 + $0xfc4] ss:$16 sps:$4 sm:$0xff]   ;;  %v5645_v8 = vld [vmem:[#allocation5 + $0xfcc] ss:$16 sps:$4 sm:$0xff]  }
 0x229   :  { %3691 = vmatprep.subr.bf16.mxu0 %v5552_v9  ;;  %4203 = vmatprep.subr.bf16.mxu1 %v5555_v10  ;;  %v5644_v9 = vld [vmem:[#allocation5 + $0xfc0] ss:$16 sps:$4 sm:$0xff]   ;;  %v5647_v10 = vld [vmem:[#allocation5 + $0xfc8] ss:$16 sps:$4 sm:$0xff]  }
 0x22c   :  { %3693 = vmatpush1.bf16.msra.mxu0 %v5554_v11  ;;  %4205 = vmatpush1.bf16.msra.mxu1 %v5557_v12  ;;  %v5648_v11 = vld [vmem:[#allocation5 + $0xfe4] ss:$16 sps:$4 sm:$0xff]   ;;  %v5651_v12 = vld [vmem:[#allocation5 + $0xfec] ss:$16 sps:$4 sm:$0xff]  }
 0x22d   :  { %3695 = vmatprep.subr.bf16.mxu0 %v5558_v13  ;;  %4207 = vmatprep.subr.bf16.mxu1 %v5561_v14  ;;  %v5650_v13 = vld [vmem:[#allocation5 + $0xfe0] ss:$16 sps:$4 sm:$0xff]   ;;  %v5653_v14 = vld [vmem:[#allocation5 + $0xfe8] ss:$16 sps:$4 sm:$0xff]  }
 0x22f   :  { %2141 = vmatmul.mubr.f32.vlgmr.msra.gmra.mrb[0].mxu0 %v110_v17  ;;  %2709 = vmatmul.mubr.f32.vlgmr.msra.gmra.mrb[0].mxu1 %v110_v17  ;;  %v2962_v17 = vld [vmem:[#allocation10 + $0x88] sm:$0xff] }
 0x230   :  { %3697 = vmatpush1.bf16.msra.mxu0 %v5560_v15  ;;  %4209 = vmatpush1.bf16.msra.mxu1 %v5563_v16  ;;  %v112_v15 = vld [vmem:[#allocation2 + $0x70] sm:$0xff]  ;;  %v2961_v16 = vld [vmem:[#allocation10 + $0x80] sm:$0xff] }
 0x231   :  { %3699 = vmatprep.subr.bf16.mxu0 %v5564_v18  ;;  %4211 = vmatprep.subr.bf16.mxu1 %v5567_v19  ;;  %v2993_v18 = vld [vmem:[#allocation10 + $0x180] sm:$0xff]  ;;  %v4270_v19 = vpack.c.bf16 %v2962_v17, %v2961_v16  ;;  %v3004_v16 = vld [vmem:[#allocation10 + $0x1d8] sm:$0xff]  ;;  %v2955_v17 = vld [vmem:[#allocation10 + $0x50] sm:$0xff] }
 0x232   :  { %2211 = vmatprep.mubr.f32.mxu0 %v113_v20  ;;  %2779 = vmatprep.mubr.f32.mxu1 %v113_v20  ;;  %v2994_v20 = vld [vmem:[#allocation10 + $0x188] sm:$0xff] }
 0x234   :  { %3701 = vmatpush1.bf16.msra.mxu0 %v5566_v21  ;;  %4213 = vmatpush1.bf16.msra.mxu1 %v5569_v22  ;;  %v2945_v21 = vld [vmem:[#allocation10] sm:$0xff]  ;;  %v2946_v22 = vld [vmem:[#allocation10 + $0x8] sm:$0xff] }
 0x235   :  { %3703 = vmatprep.subr.bf16.mxu0 %v5570_v23  ;;  %4215 = vmatprep.subr.bf16.mxu1 %v5573_v24  ;;  %v4302_v23 = vpack.c.bf16 %v2994_v20, %v2993_v18  ;;  %v4272_v24 = vpack.c.bf16 %v2946_v22, %v2945_v21  ;;  %v2956_v18 = vld [vmem:[#allocation10 + $0x58] sm:$0xff]  ;;  %v2987_v21 = vld [vmem:[#allocation10 + $0x150] sm:$0xff] }
 0x236   :  { %v4292_v20 = vpack.c.bf16 %v2956_v18, %v2955_v17  ;;  %v2988_v22 = vld [vmem:[#allocation10 + $0x158] sm:$0xff] }
 0x238   :  { %3705 = vmatpush1.bf16.msra.mxu0 %v5572_v25  ;;  %4217 = vmatpush1.bf16.msra.mxu1 %v5575_v26  ;;  %v2977_v25 = vld [vmem:[#allocation10 + $0x100] sm:$0xff]  ;;  %v2978_v26 = vld [vmem:[#allocation10 + $0x108] sm:$0xff] }
 0x239   :  { %3707 = vmatprep.subr.bf16.mxu0 %v5576_v27  ;;  %4219 = vmatprep.subr.bf16.mxu1 %v5579_v28  ;;  %v4304_v27 = vpack.c.bf16 %v2978_v26, %v2977_v25  ;;  %v2963_v28 = vld [vmem:[#allocation10 + $0x90] sm:$0xff]  ;;  %v2974_v25 = vld [vmem:[#allocation10 + $0xe8] sm:$0xff]  ;;  %v3005_v26 = vld [vmem:[#allocation10 + $0x1e0] sm:$0xff] }
 0x23c   :  { %3709 = vmatpush1.bf16.msra.mxu0 %v5578_v29  ;;  %4221 = vmatpush1.bf16.msra.mxu1 %v5581_v30  ;;  %v2964_v29 = vld [vmem:[#allocation10 + $0x98] sm:$0xff] }
 0x23d   :  { %3711 = vmatprep.subr.bf16.mxu0 %v5582_v31  ;;  %4223 = vmatprep.subr.bf16.mxu1 %v5585_v32  ;;  %v4274_v30 = vpack.c.bf16 %v2964_v29, %v2963_v28  ;;  %v2995_v31 = vld [vmem:[#allocation10 + $0x190] sm:$0xff]  ;;  %v2996_v32 = vld [vmem:[#allocation10 + $0x198] sm:$0xff]  ;;  %v3006_v28 = vld [vmem:[#allocation10 + $0x1e8] sm:$0xff] }
 0x23e   :  { %v2957_v29 = vld [vmem:[#allocation10 + $0x60] sm:$0xff] }
 0x240   :  { %3713 = vmatpush1.bf16.msra.mxu0 %v5584_v33  ;;  %4225 = vmatpush1.bf16.msra.mxu1 %v5587_v34  ;;  %v2947_v33 = vld [vmem:[#allocation10 + $0x10] sm:$0xff]  ;;  %v4306_v34 = vpack.c.bf16 %v2996_v32, %v2995_v31  ;;  %v4326_v31 = vpack.c.bf16 %v3006_v28, %v3005_v26 }
 0x241   :  { %3715 = vmatprep.subr.bf16.mxu0 %v5588_v35  ;;  %4227 = vmatprep.subr.bf16.mxu1 %v5591_v36  ;;  %v2948_v35 = vld [vmem:[#allocation10 + $0x18] sm:$0xff]  ;;  %v2979_v36 = vld [vmem:[#allocation10 + $0x110] sm:$0xff] }
 0x244   :  { %3717 = vmatpush1.bf16.msra.mxu0 %v5590_v37  ;;  %4229 = vmatpush1.bf16.msra.mxu1 %v5593_v38  ;;  %v2980_v37 = vld [vmem:[#allocation10 + $0x118] sm:$0xff]  ;;  %v4276_v38 = vpack.c.bf16 %v2948_v35, %v2947_v33  ;;  %v2989_v33 = vld [vmem:[#allocation10 + $0x160] sm:$0xff] }
 0x245   :  { %3719 = vmatprep.subr.bf16.mxu0 %v5594_v39  ;;  %4231 = vmatprep.subr.bf16.mxu1 %v5597_v40  ;;  %v4308_v39 = vpack.c.bf16 %v2980_v37, %v2979_v36  ;;  %v2965_v40 = vld [vmem:[#allocation10 + $0xa0] sm:$0xff]  ;;  %v2975_v36 = vld [vmem:[#allocation10 + $0xf0] sm:$0xff]  ;;  %v2976_v37 = vld [vmem:[#allocation10 + $0xf8] sm:$0xff] }
 0x248   :  { %3721 = vmatpush1.bf16.msra.mxu0 %v5596_v41  ;;  %4233 = vmatpush1.bf16.msra.mxu1 %v5599_v42  ;;  %v2966_v41 = vld [vmem:[#allocation10 + $0xa8] sm:$0xff]  ;;  %v2997_v42 = vld [vmem:[#allocation10 + $0x1a0] sm:$0xff] }
 0x249   :  { %3723 = vmatprep.subr.bf16.mxu0 %v5600_v43  ;;  %4235 = vmatprep.subr.bf16.mxu1 %v5603_v44  ;;  %v4278_v43 = vpack.c.bf16 %v2966_v41, %v2965_v40  ;;  %v2998_v44 = vld [vmem:[#allocation10 + $0x1a8] sm:$0xff]  ;;  %v3008_v40 = vld [vmem:[#allocation10 + $0x1f8] sm:$0xff]  ;;  %v2959_v41 = vld [vmem:[#allocation10 + $0x70] sm:$0xff] }
 0x24c   :  { %3725 = vmatpush1.bf16.msra.mxu0 %v5602_v45  ;;  %4237 = vmatpush1.bf16.msra.mxu1 %v5605_v46  ;;  %v2949_v45 = vld [vmem:[#allocation10 + $0x20] sm:$0xff]  ;;  %v2950_v46 = vld [vmem:[#allocation10 + $0x28] sm:$0xff] }
 0x24d   :  { %3727 = vmatprep.subr.bf16.mxu0 %v5606_v47  ;;  %4239 = vmatprep.subr.bf16.mxu1 %v5609_v48  ;;  %v4310_v47 = vpack.c.bf16 %v2998_v44, %v2997_v42  ;;  %v4280_v48 = vpack.c.bf16 %v2950_v46, %v2949_v45  ;;  %v2960_v42 = vld [vmem:[#allocation10 + $0x78] sm:$0xff]  ;;  %v2991_v45 = vld [vmem:[#allocation10 + $0x170] sm:$0xff] }
 0x24e   :  { %v4300_v44 = vpack.c.bf16 %v2960_v42, %v2959_v41  ;;  %v2992_v46 = vld [vmem:[#allocation10 + $0x178] sm:$0xff] }
 0x250   :  { %3729 = vmatpush1.bf16.msra.mxu0 %v5608_v49  ;;  %4241 = vmatpush1.bf16.msra.mxu1 %v5611_v50  ;;  %v2981_v49 = vld [vmem:[#allocation10 + $0x120] sm:$0xff]  ;;  %v2982_v50 = vld [vmem:[#allocation10 + $0x128] sm:$0xff] }
 0x251   :  { %3731 = vmatprep.subr.bf16.mxu0 %v5612_v51  ;;  %4243 = vmatprep.subr.bf16.mxu1 %v5615_v52  ;;  %v4312_v51 = vpack.c.bf16 %v2982_v50, %v2981_v49  ;;  %v2967_v52 = vld [vmem:[#allocation10 + $0xb0] sm:$0xff] }
 0x254   :  { %3733 = vmatpush1.bf16.msra.mxu0 %v5614_v53  ;;  %4245 = vmatpush1.bf16.msra.mxu1 %v5617_v54  ;;  %v2968_v53 = vld [vmem:[#allocation10 + $0xb8] sm:$0xff]  ;;  %v2999_v54 = vld [vmem:[#allocation10 + $0x1b0] sm:$0xff] }
 0x255   :  { %3735 = vmatprep.subr.bf16.mxu0 %v5618_v55  ;;  %4247 = vmatprep.subr.bf16.mxu1 %v5621_v56  ;;  %v4282_v55 = vpack.c.bf16 %v2968_v53, %v2967_v52  ;;  %v3000_v56 = vld [vmem:[#allocation10 + $0x1b8] sm:$0xff] }
 0x258   :  { %3737 = vmatpush1.bf16.msra.mxu0 %v5620_v57  ;;  %4249 = vmatpush1.bf16.msra.mxu1 %v5623_v58  ;;  %v2951_v57 = vld [vmem:[#allocation10 + $0x30] sm:$0xff]  ;;  %v2952_v58 = vld [vmem:[#allocation10 + $0x38] sm:$0xff] }
 0x259   :  { %3739 = vmatprep.subr.bf16.mxu0 %v5624_v59  ;;  %4251 = vmatprep.subr.bf16.mxu1 %v5627_v60  ;;  %v4314_v59 = vpack.c.bf16 %v3000_v56, %v2999_v54  ;;  %v4284_v60 = vpack.c.bf16 %v2952_v58, %v2951_v57 }
 0x25c   :  { %3741 = vmatpush1.bf16.msra.mxu0 %v5626_v61  ;;  %4253 = vmatpush1.bf16.msra.mxu1 %v5629_v62  ;;  %v2983_v61 = vld [vmem:[#allocation10 + $0x130] sm:$0xff]  ;;  %v2984_v62 = vld [vmem:[#allocation10 + $0x138] sm:$0xff] }
 0x25d   :  { %3743 = vmatprep.subr.bf16.mxu0 %v5630_v63  ;;  %4255 = vmatprep.subr.bf16.mxu1 %v5633_v0  ;;  %v4316_v63 = vpack.c.bf16 %v2984_v62, %v2983_v61  ;;  %v2969_v0 = vld [vmem:[#allocation10 + $0xc0] sm:$0xff] }
 0x260   :  { %3745 = vmatpush1.bf16.msra.mxu0 %v5632_v1  ;;  %4257 = vmatpush1.bf16.msra.mxu1 %v5635_v2  ;;  %v2970_v1 = vld [vmem:[#allocation10 + $0xc8] sm:$0xff]  ;;  %v3001_v2 = vld [vmem:[#allocation10 + $0x1c0] sm:$0xff] }
 0x261   :  { %3747 = vmatprep.subr.bf16.mxu0 %v5636_v3  ;;  %4259 = vmatprep.subr.bf16.mxu1 %v5639_v4  ;;  %v4286_v3 = vpack.c.bf16 %v2970_v1, %v2969_v0  ;;  %v3002_v4 = vld [vmem:[#allocation10 + $0x1c8] sm:$0xff] }
 0x264   :  { %3749 = vmatpush1.bf16.msra.mxu0 %v5638_v5  ;;  %4261 = vmatpush1.bf16.msra.mxu1 %v5641_v6  ;;  %v2953_v5 = vld [vmem:[#allocation10 + $0x40] sm:$0xff]  ;;  %v2954_v6 = vld [vmem:[#allocation10 + $0x48] sm:$0xff] }
 0x265   :  { %3751 = vmatprep.subr.bf16.mxu0 %v5642_v7  ;;  %4263 = vmatprep.subr.bf16.mxu1 %v5645_v8  ;;  %v4318_v7 = vpack.c.bf16 %v3002_v4, %v3001_v2  ;;  %v4288_v8 = vpack.c.bf16 %v2954_v6, %v2953_v5 }
 0x268   :  { %3753 = vmatpush1.bf16.msra.mxu0 %v5644_v9  ;;  %4265 = vmatpush1.bf16.msra.mxu1 %v5647_v10  ;;  %v2985_v9 = vld [vmem:[#allocation10 + $0x140] sm:$0xff]  ;;  %v2986_v10 = vld [vmem:[#allocation10 + $0x148] sm:$0xff] }
 0x269   :  { %3755 = vmatprep.subr.bf16.mxu0 %v5648_v11  ;;  %4267 = vmatprep.subr.bf16.mxu1 %v5651_v12  ;;  %v4320_v11 = vpack.c.bf16 %v2986_v10, %v2985_v9  ;;  %v2971_v12 = vld [vmem:[#allocation10 + $0xd0] sm:$0xff] }
 0x26c   :  { %3757 = vmatpush1.bf16.msra.mxu0 %v5650_v13  ;;  %4269 = vmatpush1.bf16.msra.mxu1 %v5653_v14  ;;  %v2972_v13 = vld [vmem:[#allocation10 + $0xd8] sm:$0xff]  ;;  %v3003_v14 = vld [vmem:[#allocation10 + $0x1d0] sm:$0xff] }
 0x26d   :  { %4271 = vmatprep.subr.bf16.mxu0 %v4270_v19  ;;  %4303 = vmatprep.subr.bf16.mxu1 %v4302_v23  ;;  %v4322_v19 = vpack.c.bf16 %v3004_v16, %v3003_v14  ;;  %v4324_v23 = vpack.c.bf16 %v2988_v22, %v2987_v21 }
 0x26f   :  { %2212 = vmatmul.mubr.f32.vlgmr.msra.gmra.mrb[0].mxu0 %v112_v15  ;;  %2780 = vmatmul.mubr.f32.vlgmr.msra.gmra.mrb[0].mxu1 %v112_v15  ;;  %v4290_v15 = vpack.c.bf16 %v2972_v13, %v2971_v12 }
 0x270   :  { %4273 = vmatpush3.bf16.msra.mxu0 %v4272_v24  ;;  %4305 = vmatpush3.bf16.msra.mxu1 %v4304_v27  ;;  %v2973_v24 = vld [vmem:[#allocation10 + $0xe0] sm:$0xff] }
 0x271   :  { %4275 = vmatprep.subr.bf16.mxu0 %v4274_v30  ;;  %4307 = vmatprep.subr.bf16.mxu1 %v4306_v34  ;;  %v4294_v27 = vpack.c.bf16 %v2974_v25, %v2973_v24  ;;  %v2958_v30 = vld [vmem:[#allocation10 + $0x68] sm:$0xff] }
 0x272   :  { %v4296_v32 = vpack.c.bf16 %v2958_v30, %v2957_v29  ;;  %v2990_v34 = vld [vmem:[#allocation10 + $0x168] sm:$0xff] }
 0x273   :  { %v4328_v35 = vpack.c.bf16 %v2990_v34, %v2989_v33 }
 0x274   :  { %4277 = vmatpush3.bf16.msra.mxu0 %v4276_v38  ;;  %4309 = vmatpush3.bf16.msra.mxu1 %v4308_v39  ;;  %v3007_v38 = vld [vmem:[#allocation10 + $0x1f0] sm:$0xff]  ;;  %v4298_v39 = vpack.c.bf16 %v2976_v37, %v2975_v36 }
 0x275   :  { %4279 = vmatprep.subr.bf16.mxu0 %v4278_v43  ;;  %4311 = vmatprep.subr.bf16.mxu1 %v4310_v47  ;;  %v4330_v43 = vpack.c.bf16 %v3008_v40, %v3007_v38  ;;  %v4332_v47 = vpack.c.bf16 %v2992_v46, %v2991_v45 }
 0x278   :  { %4281 = vmatpush3.bf16.msra.mxu0 %v4280_v48  ;;  %4313 = vmatpush3.bf16.msra.mxu1 %v4312_v51 }
 0x279   :  { %4283 = vmatprep.subr.bf16.mxu0 %v4282_v55  ;;  %4315 = vmatprep.subr.bf16.mxu1 %v4314_v59 }
 0x27c   :  { %4285 = vmatpush3.bf16.msra.mxu0 %v4284_v60  ;;  %4317 = vmatpush3.bf16.msra.mxu1 %v4316_v63 }
 0x27d   :  { %4287 = vmatprep.subr.bf16.mxu0 %v4286_v3  ;;  %4319 = vmatprep.subr.bf16.mxu1 %v4318_v7 }
 0x280   :  { %4289 = vmatpush3.bf16.msra.mxu0 %v4288_v8  ;;  %4321 = vmatpush3.bf16.msra.mxu1 %v4320_v11 }
 0x281   :  { %4291 = vmatprep.subr.bf16.mxu0 %v4290_v15  ;;  %4323 = vmatprep.subr.bf16.mxu1 %v4322_v19 }
 0x284   :  { %4293 = vmatpush3.bf16.msra.mxu0 %v4292_v20  ;;  %4325 = vmatpush3.bf16.msra.mxu1 %v4324_v23 }
 0x285   :  { %4295 = vmatprep.subr.bf16.mxu0 %v4294_v27  ;;  %4327 = vmatprep.subr.bf16.mxu1 %v4326_v31 }
 0x288   :  { %4297 = vmatpush3.bf16.msra.mxu0 %v4296_v32  ;;  %4329 = vmatpush3.bf16.msra.mxu1 %v4328_v35 }
 0x289   :  { %4299 = vmatprep.subr.bf16.mxu0 %v4298_v39  ;;  %4331 = vmatprep.subr.bf16.mxu1 %v4330_v43 }
 0x28c   :  { %4301 = vmatpush3.bf16.msra.mxu0 %v4300_v44  ;;  %4333 = vmatpush3.bf16.msra.mxu1 %v4332_v47 }
 0x342   :  { %v2213_v48 = vpop.f32.mrb[0].mxu0  ;;  %v2781_v49 = vpop.f32.mrb[0].mxu1 }
 0x343   :  { %v2786_v50 = vrot.slane %v2213_v48, 4  ;;  %v2798_v51 = vrot.slane %v2781_v49, 4  ;;  %v2215_v52 = vpop.f32.mrb[1].mxu0  ;;  %v2783_v53 = vpop.f32.mrb[1].mxu1 }
 0x344   :  { %v2792_v54 = vrot.slane %v2215_v52, 4  ;;  %v2804_v55 = vrot.slane %v2783_v53, 4 }
 0x345   :  { %v2787_v56 = vadd.f32 %v2786_v50, %v2213_v48  ;;  %v2799_v57 = vadd.f32 %v2798_v51, %v2781_v49 }
 0x346   :  { %v2793_v58 = vadd.f32 %v2792_v54, %v2215_v52  ;;  %v2805_v59 = vadd.f32 %v2804_v55, %v2783_v53 }
 0x347   :  { %v2788_v60 = vrot.slane %v2787_v56, 2  ;;  %v2800_v61 = vrot.slane %v2799_v57, 2 }
 0x348   :  { %v2794_v62 = vrot.slane %v2793_v58, 2  ;;  %v2806_v63 = vrot.slane %v2805_v59, 2 }
 0x349   :  { %v2789_v0 = vadd.f32 %v2788_v60, %v2787_v56  ;;  %v2801_v1 = vadd.f32 %v2800_v61, %v2799_v57  ;;  %v5836_v56 = vmov 1966171168  }
 0x34a   :  { %v2795_v2 = vadd.f32 %v2794_v62, %v2793_v58  ;;  %v2807_v3 = vadd.f32 %v2806_v63, %v2805_v59  ;;  %v2867_v57 = vunpack.c.l.s4 %v5836_v56  ;;  %v2869_v58 = vlaneseq }
 0x34b   :  { %v2790_v4 = vrot.slane %v2789_v0, 1  ;;  %v2802_v5 = vrot.slane %v2801_v1, 1 }
 0x34c   :  { %v2796_v6 = vrot.slane %v2795_v2, 1  ;;  %v2808_v7 = vrot.slane %v2807_v3, 1  ;;  %v2868_v59 = vunpack.c.0.s8 %v2867_v57  ;;  %v2870_v60 = vshrl.u32 %v2869_v58, 7 }
 0x34d   :  { %v2791_v8 = vadd.f32 %v2790_v4, %v2789_v0  ;;  %v2803_v9 = vadd.f32 %v2802_v5, %v2801_v1 }
 0x34e   :  { %v2797_v10 = vadd.f32 %v2796_v6, %v2795_v2  ;;  %v2809_v11 = vadd.f32 %v2808_v7, %v2807_v3  ;;  %v2871_v63 = vsub.s32 %v2868_v59, %v2870_v60  ;;  %v2851_v7 = vld [vmem:[#allocation7] sm:$0xf] }
 0x34f   :  { %v2811_v12 = vmul.f32 0.125, %v2791_v8  ;;  %v2813_v13 = vmul.f32 0.125, %v2803_v9  ;;  %v2905_v8 = vsub.s32 3, %v2870_v60 }
 0x350   :  { %v2812_v14 = vmul.f32 0.125, %v2797_v10  ;;  %v2814_v15 = vmul.f32 0.125, %v2809_v11  ;;  %v2897_v10 = vsub.s32 1, %v2870_v60  ;;  %v2915_v11 = vld [vmem:[#allocation8] sm:$0xf] }
 0x351   :  { %v5945_v16 = vsub.f32 %v2213_v48, %v2811_v12  ;;  %v5947_v17 = vsub.f32 %v2781_v49, %v2813_v13  ;;  %v2893_v12 = vsub.s32 0, %v2870_v60  ;;  %v2901_v13 = vsub.s32 2, %v2870_v60 }
 0x352   :  { %v5949_v18 = vsub.f32 %v2215_v52, %v2812_v14  ;;  %v5951_v19 = vsub.f32 %v2783_v53, %v2814_v15  ;;  %v2924_v15 = vrot.slane %v2915_v11, %v2897_v10 }
 0x353   :  { %v2819_v20 = vmul.f32 %v5945_v16, %v5945_v16  ;;  %v2821_v21 = vmul.f32 %v5947_v17, %v5947_v17 }
 0x354   :  { %v2820_v22 = vmul.f32 %v5949_v18, %v5949_v18  ;;  %v2822_v23 = vmul.f32 %v5951_v19, %v5951_v19 }
 0x355   :  { %v2823_v24 = vrot.slane %v2819_v20, 4  ;;  %v2835_v25 = vrot.slane %v2821_v21, 4 }
 0x356   :  { %v2829_v26 = vrot.slane %v2820_v22, 4  ;;  %v2841_v27 = vrot.slane %v2822_v23, 4 }
 0x357   :  { %v2824_v28 = vadd.f32 %v2823_v24, %v2819_v20  ;;  %v2836_v29 = vadd.f32 %v2835_v25, %v2821_v21  ;;  %v2932_v20 = vrot.slane %v2915_v11, %v2905_v8  ;;  %v2920_v21 = vrot.slane %v2915_v11, %v2893_v12 }
 0x358   :  { %v2830_v30 = vadd.f32 %v2829_v26, %v2820_v22  ;;  %v2842_v31 = vadd.f32 %v2841_v27, %v2822_v23  ;;  %v2928_v22 = vrot.slane %v2915_v11, %v2901_v13 }
 0x359   :  { %v2825_v32 = vrot.slane %v2824_v28, 2  ;;  %v2837_v33 = vrot.slane %v2836_v29, 2 }
 0x35a   :  { %v2831_v34 = vrot.slane %v2830_v30, 2  ;;  %v2843_v35 = vrot.slane %v2842_v31, 2 }
 0x35b   :  { %v2826_v36 = vadd.f32 %v2825_v32, %v2824_v28  ;;  %v2838_v37 = vadd.f32 %v2837_v33, %v2836_v29 }
 0x35c   :  { %v2832_v38 = vadd.f32 %v2831_v34, %v2830_v30  ;;  %v2844_v39 = vadd.f32 %v2843_v35, %v2842_v31 }
 0x35d   :  { %v2827_v40 = vrot.slane %v2826_v36, 1  ;;  %v2839_v41 = vrot.slane %v2838_v37, 1 }
 0x35e   :  { %v2833_v42 = vrot.slane %v2832_v38, 1  ;;  %v2845_v43 = vrot.slane %v2844_v39, 1 }
 0x35f   :  { %v2828_v44 = vadd.f32 %v2827_v40, %v2826_v36  ;;  %v2840_v45 = vadd.f32 %v2839_v41, %v2838_v37  ;;  %v3175_v40 = vld [vmem:[#allocation11] ss:$0 sm:$0xff] }
 0x360   :  { %v2834_v46 = vadd.f32 %v2833_v42, %v2832_v38  ;;  %v2846_v47 = vadd.f32 %v2845_v43, %v2844_v39 }
 0x361   :  { %v2847_v48 = vmul.f32 0.125, %v2828_v44  ;;  %v2849_v49 = vmul.f32 0.125, %v2840_v45 }
 0x362   :  { %v2848_v50 = vmul.f32 0.125, %v2834_v46  ;;  %v2850_v51 = vmul.f32 0.125, %v2846_v47 }
 0x363   :  { %v2852_v52 = vadd.f32 1e-05, %v2847_v48  ;;  %v2854_v53 = vadd.f32 1e-05, %v2849_v49 }
 0x364   :  { %v2853_v54 = vadd.f32 1e-05, %v2848_v50  ;;  %v2855_v55 = vadd.f32 1e-05, %v2850_v51 }
 0x365   :  { %5654 = vrsqrt.f32 %v2852_v52 }
 0x366   :  { %5656 = vrsqrt.f32 %v2854_v53 }
 0x367   :  { %5658 = vrsqrt.f32 %v2853_v54 }
 0x368   :  { %5660 = vrsqrt.f32 %v2855_v55 }
 0x36f   :  { %v5655_v61 = vpop.eup %5654 }
 0x370   :  { %v5657_v62 = vpop.eup %5656 }
 0x371   :  { %v5659_v0 = vpop.eup %5658 }
 0x372   :  { %v5661_v1 = vpop.eup %5660  ;;  %v2864_v2 = vcombine.low %v5655_v61, %v5659_v0 }
 0x373   :  { %v2865_v3 = vcombine.low %v5657_v62, %v5661_v1 }
 0x374   :  { %v2872_v4 = vrot.slane %v2864_v2, %v2871_v63 }
 0x375   :  { %v2879_v5 = vrot.slane %v2865_v3, %v2871_v63 }
 0x377   :  { %v2880_v6 = vcombine.low %v2872_v4, %v2879_v5 }
 0x379   :  { %v2887_v9 = vrot.slane %v2880_v6, %v2871_v63 }
 0x37b   :  { %v2889_v14 = vmul.f32 %v2887_v9, %v2851_v7 }
 0x37d   :  { %v2906_v23 = vrot.slane %v2889_v14, %v2905_v8  ;;  %v2898_v24 = vrot.slane %v2889_v14, %v2897_v10  ;;  %v2894_v25 = vrot.slane %v2889_v14, %v2893_v12  ;;  %v2902_v26 = vrot.slane %v2889_v14, %v2901_v13 }
 0x37f   :  { %v2914_v27 = vmul.f32 %v2906_v23, %v5951_v19  ;;  %v2912_v28 = vmul.f32 %v2898_v24, %v5949_v18  ;;  %v2911_v29 = vmul.f32 %v2894_v25, %v5945_v16  ;;  %v2913_v30 = vmul.f32 %v2902_v26, %v5947_v17 }
 0x381   :  { %v2938_v31 = vadd.f32 %v2924_v15, %v2912_v28  ;;  %v2940_v32 = vadd.f32 %v2932_v20, %v2914_v27  ;;  %v2937_v33 = vadd.f32 %v2920_v21, %v2911_v29  ;;  %v2939_v34 = vadd.f32 %v2928_v22, %v2913_v30 }
 0x383   :  { %v2942_v35 = vmax.f32 %v2938_v31, 0.0  ;;  %v2944_v36 = vmax.f32 %v2940_v32, 0.0  ;;  %v2941_v37 = vmax.f32 %v2937_v33, 0.0  ;;  %v2943_v38 = vmax.f32 %v2939_v34, 0.0 }
 0x385   :  { %3080 = vmatprep.mubr.f32.mxu0 %v2942_v35  ;;  %3150 = vmatprep.mubr.f32.mxu1 %v2944_v36 }
 0x386   :  { %3081 = vmatmul.mubr.f32.vlgmr.msra.gmra.mrb[2].mxu0 %v2941_v37  ;;  %3151 = vmatmul.mubr.f32.vlgmr.msra.gmra.mrb[2].mxu1 %v2943_v38 }
 0x459   :  { %v3208_v39 = vpop.f32.mrb[2].mxu0  ;;  %v3243_v19 = vpop.f32.mrb[2].mxu1 }
 0x45a   :  { %v3209_v18 = vpop.f32.mrb[3].mxu0  ;;  %v3244_v41 = vpop.f32.mrb[3].mxu1 }
 0x45b   :  { %v3210_v16 = vadd.f32 %v3209_v18, %v3208_v39  ;;  %v3245_v42 = vadd.f32 %v3244_v41, %v3243_v19 }
 0x45d   :  { %v3083_v17 = vadd.f32 %v3210_v16, %v3175_v40 }
 0x45f   :  { %v3153_v43 = vadd.f32 %v3245_v42, %v3083_v17 }
 0x461   :  { %3156 = vst [vmem:[#allocation13] sm:$0xff] %v3153_v43 }
 0x462   :  { %5805 = shalt.err (!%p5802_p10)
}
 0x463   :  { %s5806_s1 = scalar_lea.hbm %s5983_s6, 128 }
 0x464   :  { %p5807_p11 = scmp.ne.s32.totalorder %s5983_s6, %s5806_s1  ;;  %p5810_p12 = scmp.lt.u32.totalorder %s5806_s1, %s5983_s6 }
 0x466   :  { %p5812_p13 = pnand %p5810_p12, %p5807_p11 }
 0x468   :  { %5815 = shalt.err (!%p5812_p13)
}
 0x469   :  { %3166 = dma.vmem_to_hbm [thread:$0]  %s3164_s20, 128, %s5983_s6, [#allocation4]  }
 0x46a   :  { %5824 = dma.done.wait [#allocation4], 128  }
 0x46b   :  { %5825 = vsyncadd [#allocation4], 4294967168 }
 0x46c   :  { %3170 = vsyncpa [#allocation3], 1 }
 0x46d   :  { %3171 = vsyncpa [#allocation6], 1 }
 0x46e   :  { %3172 = vsyncpa [#allocation9], 1 }
 0x46f   :  { %3173 = vsyncpa [#allocation12], 1 }
 0x470   :  { %3174 = vsyncpa [#allocation4], 1 }

</bundles_post_ra>
